<compile_context>
chip_gen: v7x
topology: tpu7x:2x2x1
jax: 0.10.0
libtpu: 0.0.40
codegen_flags: <defaults>
</compile_context>

<pallas_src>
import math

import jax
import jax.numpy as jnp
from jax.experimental import pallas as pl
from jax.experimental.pallas import tpu as pltpu


def _round_up(x, m):
    return ((x + m - 1) // m) * m


def _pick_tm(n, tm_max, align=128):
    """Row-tile size: full N if it fits, else a divisor of N (no padding),
    else fall back to tm_max with row padding."""
    if n <= tm_max:
        return n
    cand = (tm_max // align) * align
    while cand >= align:
        if n % cand == 0:
            return cand
        cand -= align
    cand = (tm_max // 8) * 8
    while cand >= 8:
        if n % cand == 0:
            return cand
        cand -= 8
    return tm_max


def _pick_tk(n, budget, fixed, per_tk):
    """Contraction-tile size: as large as fits the VMEM budget, multiple of 128
    (or the full dim)."""
    avail = budget - fixed
    cap = max(128, avail // per_tk)
    if n <= cap:
        return n
    return max(128, int(cap // 128) * 128)


def _build_kernel(reassoc, has_scale, has_bias):
    def kernel(*refs):
        acc_ref = refs[-1]
        o_ref = refs[-2]
        it = iter(refs[:-2])
        adj_ref = next(it)
        s_ref = next(it)                       # x (reassoc) or support
        w_ref = next(it) if reassoc else None
        scale_ref = next(it) if has_scale else None
        b_ref = next(it) if has_bias else None

        k = pl.program_id(1)

        @pl.when(k == 0)
        def _():
            acc_ref[...] = jnp.zeros_like(acc_ref)

        a = adj_ref[...]
        s = s_ref[...]
        if a.dtype != s.dtype:
            # int8 / fp8 adjacency: upcast in-register, HBM bytes stay small.
            a = a.astype(jnp.float32).astype(s.dtype)
        acc_ref[...] += jnp.dot(a, s, preferred_element_type=jnp.float32)

        @pl.when(k == pl.num_programs(1) - 1)
        def _():
            acc = acc_ref[...]
            if has_scale:
                acc = acc * scale_ref[...]     # per-row dequant scale
            if reassoc:
                # Tiny matmul: keep f32 LHS and f32 weight (no quantization).
                out = jnp.dot(acc, w_ref[...].astype(jnp.float32),
                              preferred_element_type=jnp.float32)
            else:
                out = acc
            if has_bias:
                out = out + b_ref[...]
            o_ref[...] = out.astype(o_ref.dtype)

    return kernel


def graph_conv(x, adj, weight, bias=None, *, compute_dtype=jnp.bfloat16,
               adj_dtype=None, tm=None, tk=None):
    """GraphConv forward: out = adj @ (x @ weight) [+ bias].

    x: (N, F_in), adj: (N, N), weight: (F_in, F_out), bias: (F_out,) or None.
    compute_dtype: MXU streaming dtype for x / support / adj (default bf16);
      accumulation is always f32 and the output keeps x.dtype.
    adj_dtype: override for the adjacency stream only.  jnp.int8 selects a
      per-row-quantized path (v5e/v6e); a float8 dtype is accepted on parts
      that support it; None -> compute_dtype.
    """
    x = jnp.asarray(x)
    adj = jnp.asarray(adj)
    weight = jnp.asarray(weight)

    N, f_in = x.shape
    f_in_w, f_out = weight.shape
    assert f_in_w == f_in
    assert adj.shape == (N, N)
    has_bias = bias is not None

    out_dtype = x.dtype
    cd = jnp.dtype(compute_dtype) if compute_dtype is not None else jnp.dtype(x.dtype)
    adj_dt = jnp.dtype(adj_dtype) if adj_dtype is not None else cd
    use_int8 = jnp.issubdtype(adj_dt, jnp.integer)

    # F_in <= F_out: reassociate per row-tile to (adj_tile @ x) @ W (smaller
    # dominant matmul, smaller accumulator).  Otherwise precompute
    # support = x @ W once (tiny vs adj @ support) and stream it.
    reassoc = f_in <= f_out
    f_stream = f_in if reassoc else f_out
    f_acc = f_in if reassoc else f_out

    # ---- generation-aware VMEM budget ------------------------------------
    try:
        vmem_cap = int(pltpu.get_tpu_info().vmem_capacity_bytes)
    except Exception:  # pragma: no cover - conservative fallback (v7x-sized)
        vmem_cap = 64 << 20
    vmem_budget = int(0.85 * vmem_cap)

    # ---- row tile ----------------------------------------------------------
    if tm is None:
        tm = 512 if vmem_cap >= (96 << 20) else 256   # 128 MiB parts vs v7x
    tm = _pick_tm(N, tm)

    # ---- parameter / stream preparation ------------------------------------
    w_f32 = weight.astype(jnp.float32)
    b_f32 = bias.reshape(1, f_out).astype(jnp.float32) if has_bias else None
    x_c = x.astype(cd)

    scale = None
    if use_int8:
        adj_f32 = adj.astype(jnp.float32)
        row_max = jnp.max(jnp.abs(adj_f32), axis=1, keepdims=True)
        scale = jnp.where(row_max > 0, row_max / 127.0, 1.0).astype(jnp.float32)
        adj_s = jnp.clip(jnp.round(adj_f32 / scale), -127, 127).astype(jnp.int8)
    elif adj.dtype == adj_dt:
        adj_s = adj               # already in streaming dtype: no extra HBM pass
    else:
        # NOTE: for multi-layer GCNs, cast once and cache this outside the call.
        adj_s = adj.astype(adj_dt)

    if reassoc:
        stream = x_c                                            # (N, F_in)
    else:
        support = jnp.dot(x, weight, preferred_element_type=jnp.float32)
        stream = support.astype(cd)                             # (N, F_out)

    # ---- contraction tile (bounds VMEM independently of N) -----------------
    adj_isz = jnp.dtype(adj_s.dtype).itemsize
    cd_isz = cd.itemsize
    out_isz = jnp.dtype(out_dtype).itemsize

    fixed = (tm * f_acc * 4                               # f32 accumulator
             + 2 * tm * f_out * out_isz                   # output tile (x2 buf)
             + (2 * f_in * f_out * 4 if reassoc else 0)   # resident W
             + (2 * f_out * 4 if has_bias else 0)         # resident bias
             + (2 * tm * 4 if use_int8 else 0)            # per-row scales
             + (2 << 20))                                 # Mosaic slack
    per_tk = 2 * (tm * adj_isz + f_stream * cd_isz)       # double-buffered tiles

    if tk is None:
        tk = _pick_tk(N, vmem_budget, fixed, per_tk)
    elif tk >= N:
        tk = N
    else:
        tk = max(128, (tk // 128) * 128)
        tk = N if tk >= N else tk

    # ---- padding (only when a divisor tile was not available) --------------
    Nr = N if N % tm == 0 else _round_up(N, tm)
    Nk = N if N % tk == 0 else _round_up(N, tk)
    if (Nr, Nk) != adj_s.shape:
        adj_s = jnp.pad(adj_s, ((0, Nr - N), (0, Nk - N)))
    if Nk != N:
        stream = jnp.pad(stream, ((0, Nk - N), (0, 0)))
    if use_int8 and Nr != N:
        scale = jnp.pad(scale, ((0, Nr - N), (0, 0)), constant_values=1.0)

    grid = (Nr // tm, Nk // tk)

    # ---- specs --------------------------------------------------------------
    in_specs = [
        pl.BlockSpec((tm, tk), lambda i, k: (i, k)),            # adj tile
        pl.BlockSpec((tk, f_stream), lambda i, k: (k, 0)),      # x / support tile
    ]
    inputs = [adj_s, stream]
    if reassoc:
        in_specs.append(pl.BlockSpec((f_in, f_out), lambda i, k: (0, 0)))
        inputs.append(w_f32)
    if use_int8:
        in_specs.append(pl.BlockSpec((tm, 1), lambda i, k: (i, 0)))
        inputs.append(scale)
    if has_bias:
        in_specs.append(pl.BlockSpec((1, f_out), lambda i, k: (0, 0)))
        inputs.append(b_f32)

    out_specs = pl.BlockSpec((tm, f_out), lambda i, k: (i, 0))
    out_shape = jax.ShapeDtypeStruct((Nr, f_out), out_dtype)
    scratch_shapes = [pltpu.VMEM((tm, f_acc), jnp.float32)]

    est = fixed + per_tk * tk
    vmem_limit = int(min(max(est, 32 << 20), vmem_budget))

    flops = 2.0 * Nr * Nk * f_stream
    if reassoc:
        flops += 2.0 * Nr * f_in * f_out
    bytes_accessed = (Nr * Nk * adj_isz                        # adj, streamed once
                      + grid[0] * Nk * f_stream * cd_isz       # x/support per row tile
                      + (f_in * f_out * 4 if reassoc else 0)
                      + (f_out * 4 if has_bias else 0)
                      + (Nr * 4 if use_int8 else 0)
                      + Nr * f_out * out_isz)

    out = pl.pallas_call(
        _build_kernel(reassoc, use_int8, has_bias),
        out_shape=out_shape,
        grid_spec=pltpu.PrefetchScalarGridSpec(
            num_scalar_prefetch=0,
            grid=grid,
            in_specs=in_specs,
            out_specs=out_specs,
            scratch_shapes=scratch_shapes,
        ),
        compiler_params=pltpu.CompilerParams(
            # Row tiles are independent -> parallel (megacore sharding on v7x);
            # the contraction axis is last and "arbitrary".
            dimension_semantics=("parallel", "arbitrary"),
            vmem_limit_bytes=vmem_limit,
        ),
        cost_estimate=pl.CostEstimate(
            flops=int(flops),
            transcendentals=0,
            bytes_accessed=int(bytes_accessed),
        ),
    )(*inputs)

    if Nr != N:
        out = out[:N]
    return out


def graph_conv_ref(x, adj, weight, bias=None):
    out = adj @ (x @ weight)
    if bias is not None:
        out = out + bias
    return out


if __name__ == "__main__":
    key = jax.random.PRNGKey(0)

    # ---- Case 1: F_in <= F_out (reassociated path), bias --------------------
    N, f_in, f_out = 512, 64, 128
    k1, k2, k3, k4, key = jax.random.split(key, 5)
    stdv = 1.0 / math.sqrt(f_out)
    weight = jax.random.uniform(k3, (f_in, f_out), jnp.float32,
                                minval=-stdv, maxval=stdv)
    bias = jax.random.uniform(k4, (f_out,), jnp.float32,
                              minval=-stdv, maxval=stdv)
    x = jax.random.normal(k1, (N, f_in), jnp.float32)
    adj = jax.random.uniform(k2, (N, N), jnp.float32) / N

    ref = graph_conv_ref(x, adj, weight, bias)

    # Exact-precision path (f32 MXU inputs).
    out_f32 = jax.block_until_ready(
        graph_conv(x, adj, weight, bias, compute_dtype=jnp.float32))
    assert out_f32.shape == (N, f_out)
    assert jnp.allclose(out_f32, ref, atol=1e-4, rtol=1e-4), "f32 mismatch"

    # Default bandwidth-optimized path (bf16 stream, f32 accumulation).
    out_bf16 = jax.block_until_ready(graph_conv(x, adj, weight, bias))
    assert jnp.allclose(out_bf16, ref, atol=3e-2, rtol=3e-2), "bf16 mismatch"

    # int8-quantized adjacency (per-row scale) - v5e/v6e bandwidth option.
    out_i8 = jax.block_until_ready(
        graph_conv(x, adj, weight, bias, adj_dtype=jnp.int8))
    assert jnp.allclose(out_i8, ref, atol=3e-2, rtol=3e-2), "int8-adj mismatch"

    # ---- Case 2: F_in > F_out (precomputed-support path), no bias, odd N ----
    N2, f_in2, f_out2 = 200, 96, 32
    k1, k2, k3, key = jax.random.split(key, 4)
    stdv2 = 1.0 / math.sqrt(f_out2)
    weight2 = jax.random.uniform(k3, (f_in2, f_out2), jnp.float32,
                                 minval=-stdv2, maxval=stdv2)
    x2 = jax.random.normal(k1, (N2, f_in2), jnp.float32)
    adj2 = jax.random.uniform(k2, (N2, N2), jnp.float32) / N2

    ref2 = graph_conv_ref(x2, adj2, weight2, None)
    out2 = jax.block_until_ready(graph_conv(x2, adj2, weight2, None))
    assert out2.shape == (N2, f_out2)
    assert jnp.allclose(out2, ref2, atol=3e-2, rtol=3e-2), "no-bias mismatch"

    print("KERNEL_OK")
</pallas_src>

<mosaic_0001>
module attributes {stable_mosaic.version = 11 : i64} {
  func.func @kernel(%arg0: i32, %arg1: i32, %arg2: memref<256x512xf32, #tpu.memory_space<vmem>>, %arg3: memref<512x64xf32, #tpu.memory_space<vmem>>, %arg4: memref<64x128xf32, #tpu.memory_space<vmem>>, %arg5: memref<1x128xf32, #tpu.memory_space<vmem>>, %arg6: memref<256x128xf32, #tpu.memory_space<vmem>>, %arg7: memref<256x64xf32, #tpu.memory_space<vmem>>) attributes {dimension_semantics = [#tpu.dimension_semantics<parallel>, #tpu.dimension_semantics<arbitrary>], iteration_bounds = array<i64: 2, 1>, scalar_prefetch = 0 : i64, scratch_operands = 1 : i64, tpu.core_type = #tpu.core_type<tc>, window_params = [{transform_indices = @transform_0, window_bounds = array<i64: 256, 512>}, {transform_indices = @transform_1, window_bounds = array<i64: 512, 64>}, {pipeline_mode = #tpu.pipeline_mode<synchronous>, transform_indices = @transform_2, window_bounds = array<i64: 64, 128>}, {pipeline_mode = #tpu.pipeline_mode<synchronous>, transform_indices = @transform_3, window_bounds = array<i64: 1, 128>}, {transform_indices = @transform_4, window_bounds = array<i64: 256, 128>}]} {
    %c0_i32 = arith.constant 0 : i32
    %0 = arith.cmpi eq, %arg1, %c0_i32 : i32
    %1 = arith.extui %0 : i1 to i32
    %c0_i32_0 = arith.constant 0 : i32
    %2 = arith.cmpi ne, %1, %c0_i32_0 : i32
    scf.if %2 {
      %cst_10 = arith.constant 0.000000e+00 : f32
      %12 = vector.broadcast %cst_10 : f32 to vector<256x64xf32>
      %c0_11 = arith.constant 0 : index
      %c0_12 = arith.constant 0 : index
      %13 = vector.load %arg7[%c0_11, %c0_12] : memref<256x64xf32, #tpu.memory_space<vmem>>, vector<256x64xf32>
      tpu.vector_store %arg7[%c0_11, %c0_12], %12 {strides = array<i32>} : memref<256x64xf32, #tpu.memory_space<vmem>>, vector<256x64xf32>,
    } else {
    }
    %c0 = arith.constant 0 : index
    %c0_1 = arith.constant 0 : index
    %3 = vector.load %arg2[%c0, %c0_1] : memref<256x512xf32, #tpu.memory_space<vmem>>, vector<256x512xf32>
    %c0_2 = arith.constant 0 : index
    %c0_3 = arith.constant 0 : index
    %4 = vector.load %arg3[%c0_2, %c0_3] : memref<512x64xf32, #tpu.memory_space<vmem>>, vector<512x64xf32>
    %c0_4 = arith.constant 0 : index
    %c0_5 = arith.constant 0 : index
    %5 = vector.load %arg7[%c0_4, %c0_5] : memref<256x64xf32, #tpu.memory_space<vmem>>, vector<256x64xf32>
    %cst = arith.constant dense<0.000000e+00> : vector<256x64xf32>
    %6 = tpu.matmul %3, %4, %cst {dimension_numbers = #tpu.dot_dimension_numbers<[1], [0], [0], [1], [0, 0, 1, 1], [], []>} : vector<256x512xf32>, vector<512x64xf32>, vector<256x64xf32> -> vector<256x64xf32>
    %7 = arith.addf %5, %6 : vector<256x64xf32>
    %c0_6 = arith.constant 0 : index
    %c0_7 = arith.constant 0 : index
    %8 = vector.load %arg7[%c0_6, %c0_7] : memref<256x64xf32, #tpu.memory_space<vmem>>, vector<256x64xf32>
    tpu.vector_store %arg7[%c0_6, %c0_7], %7 {strides = array<i32>} : memref<256x64xf32, #tpu.memory_space<vmem>>, vector<256x64xf32>,
    %c0_i32_8 = arith.constant 0 : i32
    %9 = arith.cmpi eq, %arg1, %c0_i32_8 : i32
    %10 = arith.extui %9 : i1 to i32
    %c0_i32_9 = arith.constant 0 : i32
    %11 = arith.cmpi ne, %10, %c0_i32_9 : i32
    scf.if %11 {
      %c0_10 = arith.constant 0 : index
      %c0_11 = arith.constant 0 : index
      %12 = vector.load %arg7[%c0_10, %c0_11] : memref<256x64xf32, #tpu.memory_space<vmem>>, vector<256x64xf32>
      %c0_12 = arith.constant 0 : index
      %c0_13 = arith.constant 0 : index
      %13 = vector.load %arg4[%c0_12, %c0_13] : memref<64x128xf32, #tpu.memory_space<vmem>>, vector<64x128xf32>
      %cst_14 = arith.constant dense<0.000000e+00> : vector<256x128xf32>
      %14 = tpu.matmul %12, %13, %cst_14 {dimension_numbers = #tpu.dot_dimension_numbers<[1], [0], [0], [1], [0, 0, 1, 1], [], []>} : vector<256x64xf32>, vector<64x128xf32>, vector<256x128xf32> -> vector<256x128xf32>
      %c0_15 = arith.constant 0 : index
      %c0_16 = arith.constant 0 : index
      %15 = vector.load %arg5[%c0_15, %c0_16] : memref<1x128xf32, #tpu.memory_space<vmem>>, vector<1x128xf32>
      %16 = vector.broadcast %15 : vector<1x128xf32> to vector<256x128xf32>
      %17 = arith.addf %14, %16 : vector<256x128xf32>
      %c0_17 = arith.constant 0 : index
      %c0_18 = arith.constant 0 : index
      %18 = vector.load %arg6[%c0_17, %c0_18] : memref<256x128xf32, #tpu.memory_space<vmem>>, vector<256x128xf32>
      tpu.vector_store %arg6[%c0_17, %c0_18], %17 {strides = array<i32>} : memref<256x128xf32, #tpu.memory_space<vmem>>, vector<256x128xf32>,
    } else {
    }
    return
  }
  func.func @transform_0(%arg0: i32, %arg1: i32) -> (i32, i32) {
    %c0_i32 = arith.constant 0 : i32
    return %arg0, %arg1 : i32, i32
  }
  func.func @transform_1(%arg0: i32, %arg1: i32) -> (i32, i32) {
    %c0_i32 = arith.constant 0 : i32
    %c0_i32_0 = arith.constant 0 : i32
    return %arg1, %c0_i32 : i32, i32
  }
  func.func @transform_2(%arg0: i32, %arg1: i32) -> (i32, i32) {
    %c0_i32 = arith.constant 0 : i32
    %c0_i32_0 = arith.constant 0 : i32
    %c0_i32_1 = arith.constant 0 : i32
    return %c0_i32, %c0_i32_0 : i32, i32
  }
  func.func @transform_3(%arg0: i32, %arg1: i32) -> (i32, i32) {
    %c0_i32 = arith.constant 0 : i32
    %c0_i32_0 = arith.constant 0 : i32
    %c0_i32_1 = arith.constant 0 : i32
    return %c0_i32, %c0_i32_0 : i32, i32
  }
  func.func @transform_4(%arg0: i32, %arg1: i32) -> (i32, i32) {
    %c0_i32 = arith.constant 0 : i32
    %c0_i32_0 = arith.constant 0 : i32
    return %arg0, %c0_i32 : i32, i32
  }
}

</mosaic_0001>

<bundles_post_ra>
// kernel: tpu_custom_call.1
= control target key start
LH: loop header
LB: loop body
LE: loop exit
PB: predicated region body
PF: predicated region fallthrough
CT: control target
= control target key end

     0   :  { %9 = vsyncpa [#allocation4], 0  ;;  %s2764_s0 = inlined_call_operand.hbm [shape: f32[512,512], index: 0, kind: input, shape index: {}]   ;;  %s2765_s1 = inlined_call_operand.vmem [shape: f32[512,64], index: 1, kind: input, shape index: {}]   ;;  %s2766_s2 = inlined_call_operand.vmem [shape: f32[64,128], index: 2, kind: input, shape index: {}]   ;;  %s2767_s3 = inlined_call_operand.vmem [shape: f32[1,128], index: 3, kind: input, shape index: {}]   ;;  %s2768_s4 = inlined_call_operand.hbm [shape: f32[512,128], index: 4, kind: output, shape index: {}]  }
   0x1   :  { %11 = vsyncpa [#allocation4 + $0x1], 0 }
   0x2   :  { %12 = vsyncpa [#allocation5], 0 }
   0x3   :  { %14 = vsyncpa [#allocation5 + $0x1], 0  ;;  %s2042_s15 = smov 0   ;;  %s2044_s16 = smov 0  }
   0x4   :  { %s2046_s17 = smov 0   ;;  %s2048_s18 = smov 0  }
   0x5   :  { %s2050_s19 = smov 0   ;;  %s2052_s20 = smov 0  }
   0x6 LB: > { %s1550_s21 = sadd.s32 4294967295, %s2007_s20   ;;  %s1551_s22 = sadd.s32 4294967294, %s2007_s20   ;;  %s2007_s20 = sphi %s2052_s20, %s20_s20   ;;  %s2003_s19 = sphi %s2050_s19, %s2783_s19   ;;  %s1999_s18 = sphi %s2048_s18, %s2782_s18   ;;  %s1995_s17 = sphi %s2046_s17, %s2781_s17   ;;  %s1991_s16 = sphi %s2044_s16, %s2780_s16   ;;  %s1987_s15 = sphi %s2042_s15, %s2779_s15  }
   0x7   : > { %s32_s23 = sadd.s32 1, %s2003_s19  ;;  %s41_s24 = sadd.s32 1, %s1995_s17 }
   0x8   : > { %p34_p0 = scmp.ge.s32.totalorder %s32_s23, 2  ;;  %p48_p1 = scmp.ne.s32.totalorder %s1995_s17, %s1991_s16 }
   0x9   : > { %p49_p2 = scmp.eq.s32.totalorder %s2007_s20, 0  ;;  %p54_p3 = scmp.ne.s32.totalorder %s1991_s16, %s1987_s15 }
   0xa   : > { %s2785_s23 = smov (%p34_p0, %s32_s23), 0  ;;  %p55_p5 = scmp.eq.s32.totalorder %s1550_s21, 0 }
   0xb   : > { %p2083_p4 = por %p49_p2, %p48_p1  ;;  %s36_s26 = ssub.s32 %s2003_s19, %s2785_s23 }
   0xc   : > { %p146_p6 = scmp.eq.s32.totalorder %s1550_s21, 1  ;;  %p39_p7 = scmp.eq.s32.totalorder %s36_s26, 0 }
   0xd   : > { %p2089_p8 = por %p55_p5, %p54_p3  ;;  %p152_p10 = scmp.eq.s32.totalorder %s1551_s22, 1 }
   0xe   : > { %p2093_p9 = por %p146_p6, %p48_p1  ;;  %p1839_p13 = scmp.lt.s32.totalorder %s2007_s20, 2 }
   0xf   : > { %s2098_s29 = scalar_select %p39_p7, %s1995_s17, %s41_s24  }
  0x10   : > { %s2772_s28 = scalar_select %p2093_p9, 1, 0 }
  0x11   : > { %p2100_p11 = por %p152_p10, %p54_p3  ;;  %s187_s5 = sand.u32 1, %s1995_s17  }
  0x12   : > { %s1555_s6 = sshll.u32 %s187_s5, 10  ;;  %s1601_s7 = sshll.u32 %s2003_s19, 14 }
  0x13   : > { %s2773_s30 = scalar_select %p2100_p11, 1, 0 }
  0x14   : > { %s2111_s10 = scalar_lea.hbm %s2764_s0, %s1601_s7  ;;  %s191_s11 = scalar_lea.vmem [#allocation3], %s1555_s6 }
  0x15   : > { %s201_s12 = sshll.u32 %s191_s11, 4  ;;  %p2117_p0 = pnand %p1839_p13, %p2083_p4  ;;  %s2113_s12 = int_to_ptr.vmem [resolvable:$true] %s201_s12 }
  0x16   : > { %s2122_s14 = scalar_lea.sflag [#allocation4], %s187_s5  ;;  %s1895_s21 = scalar_lea.hbm %s2111_s10, 16384 }
  0x17   : > { %p1896_p2 = scmp.ne.s32.totalorder %s2111_s10, %s1895_s21  ;;  %p1897_p3 = pneg %p2117_p0 }
  0x18   : > { %s1900_s25 = scalar_lea.hbm %s2764_s0, 32768  ;;  %p1901_p4 = scmp.lt.u32.totalorder %s2111_s10, %s2764_s0 }
  0x19   : > { %p1898_p5 = pnand %p1897_p3, %p1896_p2  ;;  %p1902_p7 = scmp.lt.u32.totalorder %s1900_s25, %s1895_s21 }
  0x1a   : > { %p1904_p13 = scmp.lt.u32.totalorder %s1895_s21, %s2111_s10 }
  0x1b   : > { %p1899_p6 = pneg %p1898_p5  ;;  %p1903_p10 = por %p1902_p7, %p1901_p4 }
  0x1d   : > { %p1905_p12 = por %p1904_p13, %p1903_p10 }
  0x1f   : > { %p1906_p1 = pnand %p1905_p12, %p1899_p6 }
  0x21   : > { %1909 = shalt.err (!%p1906_p1)
}
  0x22   : > { %s1910_s5 = scalar_lea.vmem %s2113_s12, 16384  ;;  %s2009_s7 = smov [#allocation3]  }
  0x23   : > { %p1911_p2 = scmp.ne.s32.totalorder %s2113_s12, %s1910_s5  ;;  %s1915_s8 = sshll.u32 %s2009_s7, 4  ;;  %s1916_s8 = int_to_ptr.vmem [resolvable:$false] %s1915_s8 }
  0x24   : > { %s1917_s9 = scalar_lea.vmem %s1916_s8, 32768  ;;  %p1918_p9 = scmp.lt.s32.totalorder %s2113_s12, %s1916_s8 }
  0x25   : > { %p1913_p5 = pnand %p1911_p2, %p1897_p3  ;;  %p1919_p4 = scmp.lt.s32.totalorder %s1917_s9, %s1910_s5 }
  0x27   : > { %p1914_p11 = pneg %p1913_p5  ;;  %p1920_p7 = por %p1919_p4, %p1918_p9 }
  0x29   : > { %p1921_p10 = pnand %p1920_p7, %p1914_p11 }
  0x2b   : > { %1924 = shalt.err (!%p1921_p10)
}
  0x2c   : > { %s2010_s11 = smov 512   ;;  %s2011_s21 = smov 32  }
  0x2d   : > { %1834 = dma.hbm_to_vmem [thread:$0]  (!%p2117_p0), %s2111_s10, 16384, %s2113_s12, %s2122_s14, %s2010_s11, %s2010_s11, %s2011_s21  }
  0x2e   : > { %p209_p12 = scmp.lt.s32.totalorder %s2007_s20, 3  ;;  %p2775_p1 = scmp.ge.s32.totalorder %s2007_s20, 1 }
  0x30   : > { %p210_p3 = pnand %p2775_p1, %p209_p12 }
  0x31   : > { %s2154_s22 = sand.u32 (!%p210_p3), 1, %s1991_s16  }
  0x32   : > { %213 = sbr.rel (%p210_p3) target bundleno = 703 (0x2bf), region = 36  ;;  %s1560_s24 = sshll.u32 (!%p210_p3), %s2154_s22, 10 }
  0x33   : > { %s216_s25 = scalar_lea.sflag (!%p210_p3), [#allocation4], %s2154_s22  ;;  %s2158_s26 = scalar_lea.vmem (!%p210_p3), [#allocation3], %s1560_s24 }
  0x39   : > { %1978 = dma.done.wait (%p2089_p8), %s216_s25, 16384  }
  0x3a   : > { %1980 = vsyncadd (%p2089_p8), %s216_s25, 4294950912  ;;  %v2012_v0 = vmov 0.0|0.0   ;;  %v423_v1 = vld [vmem:[%s2765_s1] sm:$0xff]  ;;  %v424_v2 = vld [vmem:[%s2765_s1 + $0x8] sm:$0xff]  ;;  %vm262_vm0 = vcmask 523264   ;;  %s1602_s7 = sshll.u32 %s1999_s18, 12 }
  0x3b   : > { %1707 = vmatprep.subr.bf16.mxu0 %v2012_v0  ;;  %1755 = vmatprep.subr.bf16.mxu1 %v2012_v0  ;;  %v455_v3 = vld [vmem:[%s2765_s1 + $0x100] sm:$0xff]  ;;  %v1708_v4 = vpack.c.bf16 %v424_v2, %v423_v1  ;;  %v456_v5 = vld [vmem:[%s2765_s1 + $0x108] sm:$0xff]  ;;  %v425_v6 = vld [vmem:[%s2765_s1 + $0x10] sm:$0xff]  ;;  %s2710_s21 = scalar_lea.hbm %s2768_s4, %s1602_s7  ;;  %s1438_s18 = scalar_lea.sflag [#allocation5], %s2154_s22 }
  0x3c   : > { %v426_v7 = vld [vmem:[%s2765_s1 + $0x18] sm:$0xff]  ;;  %v1756_v8 = vpack.c.bf16 %v456_v5, %v455_v3  ;;  %v457_v9 = vld [vmem:[%s2765_s1 + $0x110] sm:$0xff]  ;;  %v427_v13 = vld [vmem:[%s2765_s1 + $0x20] sm:$0xff]  ;;  %p2776_p9 = scmp.ne.s32.totalorder %s2772_s28, 0  ;;  %s2014_s25 = smov [#allocation6]  }
  0x3d   : > { %v458_v10 = vld [vmem:[%s2765_s1 + $0x118] sm:$0xff]  ;;  %1709 = vmatpush1.bf16.msra.mxu0 %v1708_v4  ;;  %v1711_v11 = vpack.c.bf16 %v426_v7, %v425_v6  ;;  %v428_v14 = vld [vmem:[%s2765_s1 + $0x28] sm:$0xff]  ;;  %v459_v15 = vld [vmem:[%s2765_s1 + $0x120] sm:$0xff]  ;;  %s1929_s10 = sshll.u32 %s2014_s25, 4  ;;  %s1930_s10 = int_to_ptr.vmem [resolvable:$false] %s1929_s10 }
  0x3e   : > { %1757 = vmatpush1.bf16.msra.mxu1 %v1756_v8  ;;  %1710 = vmatprep.subr.bf16.mxu0 %v2012_v0  ;;  %v1759_v12 = vpack.c.bf16 %v458_v10, %v457_v9  ;;  %v460_v16 = vld [vmem:[%s2765_s1 + $0x128] sm:$0xff]  ;;  %v1714_v17 = vpack.c.bf16 %v428_v14, %v427_v13  ;;  %v429_v19 = vld [vmem:[%s2765_s1 + $0x30] sm:$0xff]  ;;  %v430_v20 = vld [vmem:[%s2765_s1 + $0x38] sm:$0xff]  ;;  %s1931_s12 = scalar_lea.vmem %s1930_s10, 8192 }
  0x3f   : > { %1758 = vmatprep.subr.bf16.mxu1 %v2012_v0  ;;  %v1762_v18 = vpack.c.bf16 %v460_v16, %v459_v15  ;;  %v461_v21 = vld [vmem:[%s2765_s1 + $0x130] sm:$0xff]  ;;  %v462_v22 = vld [vmem:[%s2765_s1 + $0x138] sm:$0xff]  ;;  %v1717_v23 = vpack.c.bf16 %v430_v20, %v429_v19  ;;  %v431_v25 = vld [vmem:[%s2765_s1 + $0x40] sm:$0xff] }
  0x40   : > { %v1765_v24 = vpack.c.bf16 %v462_v22, %v461_v21  ;;  %v432_v26 = vld [vmem:[%s2765_s1 + $0x48] sm:$0xff]  ;;  %v463_v27 = vld [vmem:[%s2765_s1 + $0x140] sm:$0xff]  ;;  %v433_v31 = vld [vmem:[%s2765_s1 + $0x50] sm:$0xff] }
  0x41   : > { %1712 = vmatpush1.bf16.msra.mxu0 %v1711_v11  ;;  %v464_v28 = vld [vmem:[%s2765_s1 + $0x148] sm:$0xff]  ;;  %v1720_v29 = vpack.c.bf16 %v432_v26, %v431_v25  ;;  %v434_v32 = vld [vmem:[%s2765_s1 + $0x58] sm:$0xff]  ;;  %v465_v33 = vld [vmem:[%s2765_s1 + $0x150] sm:$0xff] }
  0x42   : > { %1760 = vmatpush1.bf16.msra.mxu1 %v1759_v12  ;;  %1713 = vmatprep.subr.bf16.mxu0 %v2012_v0  ;;  %v1768_v30 = vpack.c.bf16 %v464_v28, %v463_v27  ;;  %v466_v34 = vld [vmem:[%s2765_s1 + $0x158] sm:$0xff]  ;;  %v1723_v35 = vpack.c.bf16 %v434_v32, %v433_v31  ;;  %v435_v37 = vld [vmem:[%s2765_s1 + $0x60] sm:$0xff]  ;;  %v436_v38 = vld [vmem:[%s2765_s1 + $0x68] sm:$0xff] }
  0x43   : > { %1761 = vmatprep.subr.bf16.mxu1 %v2012_v0  ;;  %v1771_v36 = vpack.c.bf16 %v466_v34, %v465_v33  ;;  %v467_v39 = vld [vmem:[%s2765_s1 + $0x160] sm:$0xff]  ;;  %v468_v40 = vld [vmem:[%s2765_s1 + $0x168] sm:$0xff]  ;;  %v298_v42 = vld [vmem:[%s2158_s26 + $0x18] sm:$0xff]  ;;  %v1726_v43 = vpack.c.bf16 %v436_v38, %v435_v37 }
  0x44   : > { %v296_v41 = vld [vmem:[%s2158_s26 + $0x8] sm:$0xff]  ;;  %808 = vmatprep.mubr.f32.mxu1 %v298_v42  ;;  %v1774_v44 = vpack.c.bf16 %v468_v40, %v467_v39  ;;  %v437_v45 = vld [vmem:[%s2765_s1 + $0x70] sm:$0xff]  ;;  %v438_v46 = vld [vmem:[%s2765_s1 + $0x78] sm:$0xff] }
  0x45   : > { %1715 = vmatpush1.bf16.msra.mxu0 %v1714_v17  ;;  %583 = vmatprep.mubr.f32.mxu0 %v296_v41  ;;  %v469_v47 = vld [vmem:[%s2765_s1 + $0x170] sm:$0xff]  ;;  %v470_v48 = vld [vmem:[%s2765_s1 + $0x178] sm:$0xff]  ;;  %v1729_v49 = vpack.c.bf16 %v438_v46, %v437_v45  ;;  %v439_v51 = vld [vmem:[%s2765_s1 + $0x80] sm:$0xff] }
  0x46   : > { %1763 = vmatpush1.bf16.msra.mxu1 %v1762_v18  ;;  %1716 = vmatprep.subr.bf16.mxu0 %v2012_v0  ;;  %v1777_v50 = vpack.c.bf16 %v470_v48, %v469_v47  ;;  %v440_v52 = vld [vmem:[%s2765_s1 + $0x88] sm:$0xff]  ;;  %v471_v53 = vld [vmem:[%s2765_s1 + $0x180] sm:$0xff]  ;;  %v441_v57 = vld [vmem:[%s2765_s1 + $0x90] sm:$0xff] }
  0x47   : > { %1764 = vmatprep.subr.bf16.mxu1 %v2012_v0  ;;  %v472_v54 = vld [vmem:[%s2765_s1 + $0x188] sm:$0xff]  ;;  %v1732_v55 = vpack.c.bf16 %v440_v52, %v439_v51  ;;  %v442_v58 = vld [vmem:[%s2765_s1 + $0x98] sm:$0xff]  ;;  %v473_v59 = vld [vmem:[%s2765_s1 + $0x190] sm:$0xff] }
  0x48   : > { %v1780_v56 = vpack.c.bf16 %v472_v54, %v471_v53  ;;  %v474_v60 = vld [vmem:[%s2765_s1 + $0x198] sm:$0xff]  ;;  %v1735_v61 = vpack.c.bf16 %v442_v58, %v441_v57  ;;  %v443_v63 = vld [vmem:[%s2765_s1 + $0xa0] sm:$0xff]  ;;  %v444_v1 = vld [vmem:[%s2765_s1 + $0xa8] sm:$0xff] }
  0x49   : > { %1718 = vmatpush1.bf16.msra.mxu0 %v1717_v23  ;;  %v1783_v62 = vpack.c.bf16 %v474_v60, %v473_v59  ;;  %v475_v2 = vld [vmem:[%s2765_s1 + $0x1a0] sm:$0xff]  ;;  %v476_v3 = vld [vmem:[%s2765_s1 + $0x1a8] sm:$0xff]  ;;  %v1738_v4 = vpack.c.bf16 %v444_v1, %v443_v63  ;;  %v445_v6 = vld [vmem:[%s2765_s1 + $0xb0] sm:$0xff] }
  0x4a   : > { %1766 = vmatpush1.bf16.msra.mxu1 %v1765_v24  ;;  %1719 = vmatprep.subr.bf16.mxu0 %v2012_v0  ;;  %v1786_v5 = vpack.c.bf16 %v476_v3, %v475_v2  ;;  %v446_v7 = vld [vmem:[%s2765_s1 + $0xb8] sm:$0xff]  ;;  %v477_v8 = vld [vmem:[%s2765_s1 + $0x1b0] sm:$0xff]  ;;  %v447_v12 = vld [vmem:[%s2765_s1 + $0xc0] sm:$0xff] }
  0x4b   : > { %1767 = vmatprep.subr.bf16.mxu1 %v2012_v0  ;;  %v478_v9 = vld [vmem:[%s2765_s1 + $0x1b8] sm:$0xff]  ;;  %v1741_v10 = vpack.c.bf16 %v446_v7, %v445_v6  ;;  %v448_v13 = vld [vmem:[%s2765_s1 + $0xc8] sm:$0xff]  ;;  %v479_v14 = vld [vmem:[%s2765_s1 + $0x1c0] sm:$0xff] }
  0x4c   : > { %v1789_v11 = vpack.c.bf16 %v478_v9, %v477_v8  ;;  %v480_v15 = vld [vmem:[%s2765_s1 + $0x1c8] sm:$0xff]  ;;  %v1744_v16 = vpack.c.bf16 %v448_v13, %v447_v12  ;;  %v449_v18 = vld [vmem:[%s2765_s1 + $0xd0] sm:$0xff]  ;;  %v450_v19 = vld [vmem:[%s2765_s1 + $0xd8] sm:$0xff] }
  0x4d   : > { %1721 = vmatpush1.bf16.msra.mxu0 %v1720_v29  ;;  %v1792_v17 = vpack.c.bf16 %v480_v15, %v479_v14  ;;  %v481_v20 = vld [vmem:[%s2765_s1 + $0x1d0] sm:$0xff]  ;;  %v482_v21 = vld [vmem:[%s2765_s1 + $0x1d8] sm:$0xff]  ;;  %v1747_v22 = vpack.c.bf16 %v450_v19, %v449_v18  ;;  %v451_v24 = vld [vmem:[%s2765_s1 + $0xe0] sm:$0xff] }
  0x4e   : > { %1769 = vmatpush1.bf16.msra.mxu1 %v1768_v30  ;;  %1722 = vmatprep.subr.bf16.mxu0 %v2012_v0  ;;  %v1795_v23 = vpack.c.bf16 %v482_v21, %v481_v20  ;;  %v452_v25 = vld [vmem:[%s2765_s1 + $0xe8] sm:$0xff]  ;;  %v483_v26 = vld [vmem:[%s2765_s1 + $0x1e0] sm:$0xff]  ;;  %v453_v30 = vld [vmem:[%s2765_s1 + $0xf0] sm:$0xff] }
  0x4f   : > { %1770 = vmatprep.subr.bf16.mxu1 %v2012_v0  ;;  %v484_v27 = vld [vmem:[%s2765_s1 + $0x1e8] sm:$0xff]  ;;  %v1750_v28 = vpack.c.bf16 %v452_v25, %v451_v24  ;;  %v454_v31 = vld [vmem:[%s2765_s1 + $0xf8] sm:$0xff]  ;;  %v485_v32 = vld [vmem:[%s2765_s1 + $0x1f0] sm:$0xff] }
  0x50   : > { %v1798_v29 = vpack.c.bf16 %v484_v27, %v483_v26  ;;  %v486_v33 = vld [vmem:[%s2765_s1 + $0x1f8] sm:$0xff]  ;;  %v1753_v34 = vpack.c.bf16 %v454_v31, %v453_v30  ;;  %v297_v37 = vld [vmem:[%s2158_s26 + $0x10] sm:$0xff]  ;;  %v300_v38 = vld [vmem:[%s2158_s26 + $0x28] sm:$0xff] }
  0x51   : > { %1724 = vmatpush1.bf16.msra.mxu0 %v1723_v35  ;;  %v1801_v35 = vpack.c.bf16 %v486_v33, %v485_v32  ;;  %v1069_v39 = vld [vmem:[%s2766_s2] sm:$0xff]  ;;  %v1070_v40 = vld [vmem:[%s2766_s2 + $0x8] sm:$0xff]  ;;  %v302_v41 = vld [vmem:[%s2158_s26 + $0x38] sm:$0xff] }
  0x52   : > { %1772 = vmatpush1.bf16.msra.mxu1 %v1771_v36  ;;  %1725 = vmatprep.subr.bf16.mxu0 %v2012_v0  ;;  %v295_v36 = vld [vmem:[%s2158_s26] sm:$0xff]  ;;  %v1803_v42 = vpack.c.bf16 %v1070_v40, %v1069_v39  ;;  %v306_v45 = vld [vmem:[%s2158_s26 + $0x58] sm:$0xff]  ;;  %v305_v47 = vld [vmem:[%s2158_s26 + $0x50] sm:$0xff] }
  0x53   : > { %1773 = vmatprep.subr.bf16.mxu1 %v2012_v0  ;;  %v303_v46 = vld [vmem:[%s2158_s26 + $0x40] sm:$0xff]  ;;  %v308_v48 = vld [vmem:[%s2158_s26 + $0x68] sm:$0xff]  ;;  %v309_v51 = vld [vmem:[%s2158_s26 + $0x70] sm:$0xff] }
  0x54   : > { %v312_v52 = vld [vmem:[%s2158_s26 + $0x88] sm:$0xff]  ;;  %v314_v53 = vld [vmem:[%s2158_s26 + $0x98] sm:$0xff]  ;;  %v311_v54 = vld [vmem:[%s2158_s26 + $0x80] sm:$0xff] }
  0x55   : > { %1727 = vmatpush1.bf16.msra.mxu0 %v1726_v43  ;;  %v301_v43 = vld [vmem:[%s2158_s26 + $0x30] sm:$0xff]  ;;  %v318_v57 = vld [vmem:[%s2158_s26 + $0xb8] sm:$0xff]  ;;  %v315_v58 = vld [vmem:[%s2158_s26 + $0xa0] sm:$0xff] }
  0x56   : > { %1775 = vmatpush1.bf16.msra.mxu1 %v1774_v44  ;;  %1728 = vmatprep.subr.bf16.mxu0 %v2012_v0  ;;  %v304_v44 = vld [vmem:[%s2158_s26 + $0x48] sm:$0xff]  ;;  %v317_v59 = vld [vmem:[%s2158_s26 + $0xb0] sm:$0xff]  ;;  %v326_v2 = vld [vmem:[%s2158_s26 + $0xf8] sm:$0xff] }
  0x57   : > { %1776 = vmatprep.subr.bf16.mxu1 %v2012_v0  ;;  %v320_v60 = vld [vmem:[%s2158_s26 + $0xc8] sm:$0xff]  ;;  %v321_v63 = vld [vmem:[%s2158_s26 + $0xd0] sm:$0xff]  ;;  %v323_v3 = vld [vmem:[%s2158_s26 + $0xe0] sm:$0xff] }
  0x58   : > { %v324_v1 = vld [vmem:[%s2158_s26 + $0xe8] sm:$0xff]  ;;  %v330_v6 = vld [vmem:[%s2158_s26 + $0x118] sm:$0xff]  ;;  %v327_v7 = vld [vmem:[%s2158_s26 + $0x100] sm:$0xff] }
  0x59   : > { %1730 = vmatpush1.bf16.msra.mxu0 %v1729_v49  ;;  %v310_v49 = vld [vmem:[%s2158_s26 + $0x78] sm:$0xff]  ;;  %v329_v8 = vld [vmem:[%s2158_s26 + $0x110] sm:$0xff]  ;;  %v332_v9 = vld [vmem:[%s2158_s26 + $0x128] sm:$0xff] }
  0x5a   : > { %1778 = vmatpush1.bf16.msra.mxu1 %v1777_v50  ;;  %1731 = vmatprep.subr.bf16.mxu0 %v2012_v0  ;;  %v307_v50 = vld [vmem:[%s2158_s26 + $0x60] sm:$0xff]  ;;  %v333_v12 = vld [vmem:[%s2158_s26 + $0x130] sm:$0xff]  ;;  %v336_v13 = vld [vmem:[%s2158_s26 + $0x148] sm:$0xff] }
  0x5b   : > { %1779 = vmatprep.subr.bf16.mxu1 %v2012_v0  ;;  %v338_v14 = vld [vmem:[%s2158_s26 + $0x158] sm:$0xff]  ;;  %v335_v15 = vld [vmem:[%s2158_s26 + $0x140] sm:$0xff]  ;;  %v341_v20 = vld [vmem:[%s2158_s26 + $0x170] sm:$0xff] }
  0x5c   : > { %v342_v18 = vld [vmem:[%s2158_s26 + $0x178] sm:$0xff]  ;;  %v339_v19 = vld [vmem:[%s2158_s26 + $0x160] sm:$0xff]  ;;  %v344_v21 = vld [vmem:[%s2158_s26 + $0x188] sm:$0xff] }
  0x5d   : > { %1733 = vmatpush1.bf16.msra.mxu0 %v1732_v55  ;;  %v313_v55 = vld [vmem:[%s2158_s26 + $0x90] sm:$0xff]  ;;  %v348_v25 = vld [vmem:[%s2158_s26 + $0x1a8] sm:$0xff]  ;;  %v350_v26 = vld [vmem:[%s2158_s26 + $0x1b8] sm:$0xff] }
  0x5e   : > { %1781 = vmatpush1.bf16.msra.mxu1 %v1780_v56  ;;  %1734 = vmatprep.subr.bf16.mxu0 %v2012_v0  ;;  %v316_v56 = vld [vmem:[%s2158_s26 + $0xa8] sm:$0xff]  ;;  %v345_v24 = vld [vmem:[%s2158_s26 + $0x190] sm:$0xff]  ;;  %v347_v27 = vld [vmem:[%s2158_s26 + $0x1a0] sm:$0xff] }
  0x5f   : > { %1782 = vmatprep.subr.bf16.mxu1 %v2012_v0  ;;  %v354_v30 = vld [vmem:[%s2158_s26 + $0x1d8] sm:$0xff]  ;;  %v351_v31 = vld [vmem:[%s2158_s26 + $0x1c0] sm:$0xff]  ;;  %v353_v32 = vld [vmem:[%s2158_s26 + $0x1d0] sm:$0xff] }
  0x60   : > { %v356_v33 = vld [vmem:[%s2158_s26 + $0x1e8] sm:$0xff]  ;;  %v359_v39 = vld [vmem:[%s2158_s26 + $0x200] sm:$0xff]  ;;  %v361_v40 = vld [vmem:[%s2158_s26 + $0x210] sm:$0xff] }
  0x61   : > { %1736 = vmatpush1.bf16.msra.mxu0 %v1735_v61  ;;  %v322_v61 = vld [vmem:[%s2158_s26 + $0xd8] sm:$0xff] }
  0x62   : > { %1784 = vmatpush1.bf16.msra.mxu1 %v1783_v62  ;;  %1737 = vmatprep.subr.bf16.mxu0 %v2012_v0  ;;  %v319_v62 = vld [vmem:[%s2158_s26 + $0xc0] sm:$0xff] }
  0x63   : > { %1785 = vmatprep.subr.bf16.mxu1 %v2012_v0 }
  0x65   : > { %1739 = vmatpush1.bf16.msra.mxu0 %v1738_v4  ;;  %v325_v4 = vld [vmem:[%s2158_s26 + $0xf0] sm:$0xff] }
  0x66   : > { %1787 = vmatpush1.bf16.msra.mxu1 %v1786_v5  ;;  %1740 = vmatprep.subr.bf16.mxu0 %v2012_v0  ;;  %v328_v5 = vld [vmem:[%s2158_s26 + $0x108] sm:$0xff] }
  0x67   : > { %1788 = vmatprep.subr.bf16.mxu1 %v2012_v0 }
  0x69   : > { %1742 = vmatpush1.bf16.msra.mxu0 %v1741_v10  ;;  %v334_v10 = vld [vmem:[%s2158_s26 + $0x138] sm:$0xff] }
  0x6a   : > { %1790 = vmatpush1.bf16.msra.mxu1 %v1789_v11  ;;  %1743 = vmatprep.subr.bf16.mxu0 %v2012_v0  ;;  %v331_v11 = vld [vmem:[%s2158_s26 + $0x120] sm:$0xff] }
  0x6b   : > { %1791 = vmatprep.subr.bf16.mxu1 %v2012_v0 }
  0x6d   : > { %1745 = vmatpush1.bf16.msra.mxu0 %v1744_v16  ;;  %v337_v16 = vld [vmem:[%s2158_s26 + $0x150] sm:$0xff] }
  0x6e   : > { %1793 = vmatpush1.bf16.msra.mxu1 %v1792_v17  ;;  %1746 = vmatprep.subr.bf16.mxu0 %v2012_v0  ;;  %v340_v17 = vld [vmem:[%s2158_s26 + $0x168] sm:$0xff] }
  0x6f   : > { %1794 = vmatprep.subr.bf16.mxu1 %v2012_v0 }
  0x71   : > { %1748 = vmatpush1.bf16.msra.mxu0 %v1747_v22  ;;  %v346_v22 = vld [vmem:[%s2158_s26 + $0x198] sm:$0xff] }
  0x72   : > { %1796 = vmatpush1.bf16.msra.mxu1 %v1795_v23  ;;  %1749 = vmatprep.subr.bf16.mxu0 %v2012_v0  ;;  %v343_v23 = vld [vmem:[%s2158_s26 + $0x180] sm:$0xff] }
  0x73   : > { %1797 = vmatprep.subr.bf16.mxu1 %v2012_v0 }
  0x75   : > { %1751 = vmatpush1.bf16.msra.mxu0 %v1750_v28  ;;  %v349_v28 = vld [vmem:[%s2158_s26 + $0x1b0] sm:$0xff] }
  0x76   : > { %1799 = vmatpush1.bf16.msra.mxu1 %v1798_v29  ;;  %1752 = vmatprep.subr.bf16.mxu0 %v2012_v0  ;;  %v352_v29 = vld [vmem:[%s2158_s26 + $0x1c8] sm:$0xff] }
  0x77   : > { %1800 = vmatprep.subr.bf16.mxu1 %v2012_v0  ;;  %v299_v0 = vld [vmem:[%s2158_s26 + $0x20] sm:$0xff] }
  0x79   : > { %1754 = vmatpush1.bf16.msra.mxu0 %v1753_v34  ;;  %v358_v34 = vld [vmem:[%s2158_s26 + $0x1f8] sm:$0xff] }
  0x7a   : > { %1802 = vmatpush1.bf16.msra.mxu1 %v1801_v35  ;;  %1804 = vmatprep.subr.bf16.mxu0 %v1803_v42  ;;  %v355_v35 = vld [vmem:[%s2158_s26 + $0x1e0] sm:$0xff] }
  0x7b   : > { %1819 = vmatprep.subr.bf16.mxu1 %v1803_v42 }
  0x7c   : > { %584 = vmatmul.mubr.f32.vlgmr.msra.gmra.mrb[0].mxu0 %v295_v36  ;;  %v357_v36 = vld [vmem:[%s2158_s26 + $0x1f0] sm:$0xff] }
  0x7d   : > { %809 = vmatmul.mubr.f32.vlgmr.msra.gmra.mrb[0].mxu1 %v297_v37  ;;  %588 = vmatprep.mubr.f32.mxu0 %v300_v38  ;;  %v360_v37 = vld [vmem:[%s2158_s26 + $0x208] sm:$0xff]  ;;  %v362_v38 = vld [vmem:[%s2158_s26 + $0x218] sm:$0xff] }
  0x7e   : > { %813 = vmatprep.mubr.f32.mxu1 %v302_v41  ;;  %1806 = vmatpush3.bf16.msra.mxu0 %v1803_v42  ;;  %v364_v41 = vld [vmem:[%s2158_s26 + $0x228] sm:$0xff] }
  0x7f   : > { %1823 = vmatpush3.bf16.msra.mxu1 %v1803_v42  ;;  %v366_v42 = vld [vmem:[%s2158_s26 + $0x238] sm:$0xff] }
  0x80   : > { %589 = vmatmul.mubr.f32.gmra.mrb[2].mxu0 %v299_v0  ;;  %v363_v0 = vld [vmem:[%s2158_s26 + $0x220] sm:$0xff] }
  0x81   : > { %814 = vmatmul.mubr.f32.gmra.mrb[2].mxu1 %v301_v43  ;;  %593 = vmatprep.mubr.f32.mxu0 %v304_v44  ;;  %v365_v43 = vld [vmem:[%s2158_s26 + $0x230] sm:$0xff]  ;;  %v368_v44 = vld [vmem:[%s2158_s26 + $0x248] sm:$0xff] }
  0x82   : > { %818 = vmatprep.mubr.f32.mxu1 %v306_v45  ;;  %v370_v45 = vld [vmem:[%s2158_s26 + $0x258] sm:$0xff] }
  0x84   : > { %594 = vmatmul.mubr.f32.gmra.mrb[4].mxu0 %v303_v46  ;;  %v367_v46 = vld [vmem:[%s2158_s26 + $0x240] sm:$0xff] }
  0x85   : > { %819 = vmatmul.mubr.f32.gmra.mrb[4].mxu1 %v305_v47  ;;  %598 = vmatprep.mubr.f32.mxu0 %v308_v48  ;;  %v369_v47 = vld [vmem:[%s2158_s26 + $0x250] sm:$0xff]  ;;  %v372_v48 = vld [vmem:[%s2158_s26 + $0x268] sm:$0xff] }
  0x86   : > { %823 = vmatprep.mubr.f32.mxu1 %v310_v49  ;;  %v374_v49 = vld [vmem:[%s2158_s26 + $0x278] sm:$0xff] }
  0x88   : > { %599 = vmatmul.mubr.f32.gmra.mrb[6].mxu0 %v307_v50  ;;  %v371_v50 = vld [vmem:[%s2158_s26 + $0x260] sm:$0xff] }
  0x89   : > { %824 = vmatmul.mubr.f32.gmra.mrb[6].mxu1 %v309_v51  ;;  %603 = vmatprep.mubr.f32.mxu0 %v312_v52  ;;  %v373_v51 = vld [vmem:[%s2158_s26 + $0x270] sm:$0xff]  ;;  %v376_v52 = vld [vmem:[%s2158_s26 + $0x288] sm:$0xff] }
  0x8a   : > { %828 = vmatprep.mubr.f32.mxu1 %v314_v53  ;;  %v378_v53 = vld [vmem:[%s2158_s26 + $0x298] sm:$0xff] }
  0x8c   : > { %604 = vmatmul.mubr.f32.gmra.mrb[8].mxu0 %v311_v54  ;;  %v375_v54 = vld [vmem:[%s2158_s26 + $0x280] sm:$0xff] }
  0x8d   : > { %829 = vmatmul.mubr.f32.gmra.mrb[8].mxu1 %v313_v55  ;;  %608 = vmatprep.mubr.f32.mxu0 %v316_v56  ;;  %v377_v55 = vld [vmem:[%s2158_s26 + $0x290] sm:$0xff]  ;;  %v380_v56 = vld [vmem:[%s2158_s26 + $0x2a8] sm:$0xff] }
  0x8e   : > { %833 = vmatprep.mubr.f32.mxu1 %v318_v57  ;;  %v382_v57 = vld [vmem:[%s2158_s26 + $0x2b8] sm:$0xff] }
  0x90   : > { %609 = vmatmul.mubr.f32.gmra.mrb[10].mxu0 %v315_v58  ;;  %v2013_v58 = vmov 0.0  }
  0x91   : > { %834 = vmatmul.mubr.f32.gmra.mrb[10].mxu1 %v317_v59  ;;  %613 = vmatprep.mubr.f32.mxu0 %v320_v60  ;;  %263 = vst.msk [vmem:[#allocation2] sm:$0xff] %vm262_vm0, %v2013_v58  ;;  %264 = vst.msk [vmem:[#allocation2 + $0x8] sm:$0xff] %vm262_vm0, %v2013_v58  ;;  %v379_v59 = vld [vmem:[%s2158_s26 + $0x2a0] sm:$0xff]  ;;  %v381_v60 = vld [vmem:[%s2158_s26 + $0x2b0] sm:$0xff] }
  0x92   : > { %838 = vmatprep.mubr.f32.mxu1 %v322_v61  ;;  %265 = vst.msk [vmem:[#allocation2 + $0x10] sm:$0xff] %vm262_vm0, %v2013_v58  ;;  %266 = vst.msk [vmem:[#allocation2 + $0x18] sm:$0xff] %vm262_vm0, %v2013_v58  ;;  %v384_v61 = vld [vmem:[%s2158_s26 + $0x2c8] sm:$0xff] }
  0x93   : > { %267 = vst.msk [vmem:[#allocation2 + $0x20] sm:$0xff] %vm262_vm0, %v2013_v58  ;;  %268 = vst.msk [vmem:[#allocation2 + $0x28] sm:$0xff] %vm262_vm0, %v2013_v58 }
  0x94   : > { %614 = vmatmul.mubr.f32.gmra.mrb[12].mxu0 %v319_v62  ;;  %269 = vst.msk [vmem:[#allocation2 + $0x30] sm:$0xff] %vm262_vm0, %v2013_v58  ;;  %270 = vst.msk [vmem:[#allocation2 + $0x38] sm:$0xff] %vm262_vm0, %v2013_v58  ;;  %v386_v62 = vld [vmem:[%s2158_s26 + $0x2d8] sm:$0xff] }
  0x95   : > { %839 = vmatmul.mubr.f32.gmra.mrb[12].mxu1 %v321_v63  ;;  %618 = vmatprep.mubr.f32.mxu0 %v324_v1  ;;  %271 = vst.msk [vmem:[#allocation2 + $0x40] sm:$0xff] %vm262_vm0, %v2013_v58  ;;  %272 = vst.msk [vmem:[#allocation2 + $0x48] sm:$0xff] %vm262_vm0, %v2013_v58  ;;  %v383_v63 = vld [vmem:[%s2158_s26 + $0x2c0] sm:$0xff]  ;;  %v385_v1 = vld [vmem:[%s2158_s26 + $0x2d0] sm:$0xff] }
  0x96   : > { %843 = vmatprep.mubr.f32.mxu1 %v326_v2  ;;  %273 = vst.msk [vmem:[#allocation2 + $0x50] sm:$0xff] %vm262_vm0, %v2013_v58  ;;  %274 = vst.msk [vmem:[#allocation2 + $0x58] sm:$0xff] %vm262_vm0, %v2013_v58  ;;  %v388_v2 = vld [vmem:[%s2158_s26 + $0x2e8] sm:$0xff] }
  0x97   : > { %275 = vst.msk [vmem:[#allocation2 + $0x60] sm:$0xff] %vm262_vm0, %v2013_v58  ;;  %276 = vst.msk [vmem:[#allocation2 + $0x68] sm:$0xff] %vm262_vm0, %v2013_v58 }
  0x98   : > { %619 = vmatmul.mubr.f32.gmra.mrb[14].mxu0 %v323_v3  ;;  %277 = vst.msk [vmem:[#allocation2 + $0x70] sm:$0xff] %vm262_vm0, %v2013_v58  ;;  %278 = vst.msk [vmem:[#allocation2 + $0x78] sm:$0xff] %vm262_vm0, %v2013_v58  ;;  %v1071_v3 = vld [vmem:[%s2766_s2 + $0x10] sm:$0xff] }
  0x99   : > { %844 = vmatmul.mubr.f32.gmra.mrb[14].mxu1 %v325_v4  ;;  %623 = vmatprep.mubr.f32.mxu0 %v328_v5  ;;  %279 = vst.msk [vmem:[#allocation2 + $0x80] sm:$0xff] %vm262_vm0, %v2013_v58  ;;  %280 = vst.msk [vmem:[#allocation2 + $0x88] sm:$0xff] %vm262_vm0, %v2013_v58  ;;  %v1072_v4 = vld [vmem:[%s2766_s2 + $0x18] sm:$0xff] }
  0x9a   : > { %848 = vmatprep.mubr.f32.mxu1 %v330_v6  ;;  %281 = vst.msk [vmem:[#allocation2 + $0x90] sm:$0xff] %vm262_vm0, %v2013_v58  ;;  %282 = vst.msk [vmem:[#allocation2 + $0x98] sm:$0xff] %vm262_vm0, %v2013_v58  ;;  %v390_v5 = vld [vmem:[%s2158_s26 + $0x2f8] sm:$0xff]  ;;  %v1807_v6 = vpack.c.bf16 %v1072_v4, %v1071_v3 }
  0x9b   : > { %283 = vst.msk [vmem:[#allocation2 + $0xa0] sm:$0xff] %vm262_vm0, %v2013_v58  ;;  %284 = vst.msk [vmem:[#allocation2 + $0xa8] sm:$0xff] %vm262_vm0, %v2013_v58 }
  0x9c   : > { %624 = vmatmul.mubr.f32.gmra.mrb[16].mxu0 %v327_v7  ;;  %285 = vst.msk [vmem:[#allocation2 + $0xb0] sm:$0xff] %vm262_vm0, %v2013_v58  ;;  %286 = vst.msk [vmem:[#allocation2 + $0xb8] sm:$0xff] %vm262_vm0, %v2013_v58  ;;  %v387_v7 = vld [vmem:[%s2158_s26 + $0x2e0] sm:$0xff]  ;;  %1808 = vmatprep.subr.bf16.mxu0 %v1807_v6 }
  0x9d   : > { %849 = vmatmul.mubr.f32.gmra.mrb[16].mxu1 %v329_v8  ;;  %628 = vmatprep.mubr.f32.mxu0 %v332_v9  ;;  %287 = vst.msk [vmem:[#allocation2 + $0xc0] sm:$0xff] %vm262_vm0, %v2013_v58  ;;  %288 = vst.msk [vmem:[#allocation2 + $0xc8] sm:$0xff] %vm262_vm0, %v2013_v58  ;;  %v389_v8 = vld [vmem:[%s2158_s26 + $0x2f0] sm:$0xff]  ;;  %v392_v9 = vld [vmem:[%s2158_s26 + $0x308] sm:$0xff] }
  0x9e   : > { %853 = vmatprep.mubr.f32.mxu1 %v334_v10  ;;  %289 = vst.msk [vmem:[#allocation2 + $0xd0] sm:$0xff] %vm262_vm0, %v2013_v58  ;;  %290 = vst.msk [vmem:[#allocation2 + $0xd8] sm:$0xff] %vm262_vm0, %v2013_v58  ;;  %v1073_v10 = vld [vmem:[%s2766_s2 + $0x20] sm:$0xff]  ;;  %1810 = vmatpush3.bf16.msra.mxu0 %v1807_v6 }
  0x9f   : > { %291 = vst.msk [vmem:[#allocation2 + $0xe0] sm:$0xff] %vm262_vm0, %v2013_v58  ;;  %292 = vst.msk [vmem:[#allocation2 + $0xe8] sm:$0xff] %vm262_vm0, %v2013_v58  ;;  %1820 = vmatprep.subr.bf16.mxu1 %v1807_v6 }
  0xa0   : > { %629 = vmatmul.mubr.f32.gmra.mrb[18].mxu0 %v331_v11  ;;  %293 = vst.msk [vmem:[#allocation2 + $0xf0] sm:$0xff] %vm262_vm0, %v2013_v58  ;;  %294 = vst.msk [vmem:[#allocation2 + $0xf8] sm:$0xff] %vm262_vm0, %v2013_v58  ;;  %v1074_v11 = vld [vmem:[%s2766_s2 + $0x28] sm:$0xff]  ;;  %1824 = vmatpush3.bf16.msra.mxu1 %v1807_v6 }
  0xa1   : > { %854 = vmatmul.mubr.f32.gmra.mrb[18].mxu1 %v333_v12  ;;  %633 = vmatprep.mubr.f32.mxu0 %v336_v13  ;;  %v394_v12 = vld [vmem:[%s2158_s26 + $0x318] sm:$0xff]  ;;  %v1811_v13 = vpack.c.bf16 %v1074_v11, %v1073_v10 }
  0xa2   : > { %858 = vmatprep.mubr.f32.mxu1 %v338_v14  ;;  %v391_v14 = vld [vmem:[%s2158_s26 + $0x300] sm:$0xff] }
  0xa3   : > { %1812 = vmatprep.subr.bf16.mxu0 %v1811_v13  ;;  %1821 = vmatprep.subr.bf16.mxu1 %v1811_v13 }
  0xa4   : > { %634 = vmatmul.mubr.f32.gmra.mrb[20].mxu0 %v335_v15  ;;  %v393_v15 = vld [vmem:[%s2158_s26 + $0x310] sm:$0xff]  ;;  %1825 = vmatpush3.bf16.msra.mxu1 %v1811_v13 }
  0xa5   : > { %859 = vmatmul.mubr.f32.gmra.mrb[20].mxu1 %v337_v16  ;;  %638 = vmatprep.mubr.f32.mxu0 %v340_v17  ;;  %v396_v16 = vld [vmem:[%s2158_s26 + $0x328] sm:$0xff]  ;;  %v1075_v17 = vld [vmem:[%s2766_s2 + $0x30] sm:$0xff] }
  0xa6   : > { %863 = vmatprep.mubr.f32.mxu1 %v342_v18  ;;  %v1076_v18 = vld [vmem:[%s2766_s2 + $0x38] sm:$0xff]  ;;  %1814 = vmatpush3.bf16.msra.mxu0 %v1811_v13  ;;  %v491_v13 = vld [vmem:[#allocation2 + $0x20] sm:$0xff] }
  0xa8   : > { %639 = vmatmul.mubr.f32.gmra.mrb[22].mxu0 %v339_v19  ;;  %v398_v19 = vld [vmem:[%s2158_s26 + $0x338] sm:$0xff] }
  0xa9   : > { %864 = vmatmul.mubr.f32.gmra.mrb[22].mxu1 %v341_v20  ;;  %643 = vmatprep.mubr.f32.mxu0 %v344_v21  ;;  %v1815_v20 = vpack.c.bf16 %v1076_v18, %v1075_v17  ;;  %v395_v21 = vld [vmem:[%s2158_s26 + $0x320] sm:$0xff] }
  0xaa   : > { %868 = vmatprep.mubr.f32.mxu1 %v346_v22  ;;  %v397_v22 = vld [vmem:[%s2158_s26 + $0x330] sm:$0xff] }
  0xab   : > { %1816 = vmatprep.subr.bf16.mxu0 %v1815_v20  ;;  %1822 = vmatprep.subr.bf16.mxu1 %v1815_v20 }
  0xac   : > { %644 = vmatmul.mubr.f32.gmra.mrb[24].mxu0 %v343_v23  ;;  %v400_v23 = vld [vmem:[%s2158_s26 + $0x348] sm:$0xff]  ;;  %1826 = vmatpush3.bf16.msra.mxu1 %v1815_v20 }
  0xad   : > { %869 = vmatmul.mubr.f32.gmra.mrb[24].mxu1 %v345_v24  ;;  %648 = vmatprep.mubr.f32.mxu0 %v348_v25  ;;  %v402_v24 = vld [vmem:[%s2158_s26 + $0x358] sm:$0xff]  ;;  %v399_v25 = vld [vmem:[%s2158_s26 + $0x340] sm:$0xff] }
  0xae   : > { %873 = vmatprep.mubr.f32.mxu1 %v350_v26  ;;  %1818 = vmatpush3.bf16.msra.mxu0 %v1815_v20  ;;  %v401_v26 = vld [vmem:[%s2158_s26 + $0x350] sm:$0xff] }
  0xb0   : > { %649 = vmatmul.mubr.f32.gmra.mrb[26].mxu0 %v347_v27  ;;  %v404_v27 = vld [vmem:[%s2158_s26 + $0x368] sm:$0xff] }
  0xb1   : > { %874 = vmatmul.mubr.f32.gmra.mrb[26].mxu1 %v349_v28  ;;  %653 = vmatprep.mubr.f32.mxu0 %v352_v29  ;;  %v406_v28 = vld [vmem:[%s2158_s26 + $0x378] sm:$0xff]  ;;  %v403_v29 = vld [vmem:[%s2158_s26 + $0x360] sm:$0xff] }
  0xb2   : > { %878 = vmatprep.mubr.f32.mxu1 %v354_v30  ;;  %v405_v30 = vld [vmem:[%s2158_s26 + $0x370] sm:$0xff] }
  0xb4   : > { %654 = vmatmul.mubr.f32.gmra.mrb[28].mxu0 %v351_v31  ;;  %v408_v31 = vld [vmem:[%s2158_s26 + $0x388] sm:$0xff] }
  0xb5   : > { %879 = vmatmul.mubr.f32.gmra.mrb[28].mxu1 %v353_v32  ;;  %658 = vmatprep.mubr.f32.mxu0 %v356_v33  ;;  %v410_v32 = vld [vmem:[%s2158_s26 + $0x398] sm:$0xff]  ;;  %v407_v33 = vld [vmem:[%s2158_s26 + $0x380] sm:$0xff] }
  0xb6   : > { %883 = vmatprep.mubr.f32.mxu1 %v358_v34  ;;  %v409_v34 = vld [vmem:[%s2158_s26 + $0x390] sm:$0xff] }
  0xb8   : > { %659 = vmatmul.mubr.f32.gmra.mrb[30].mxu0 %v355_v35  ;;  %v412_v35 = vld [vmem:[%s2158_s26 + $0x3a8] sm:$0xff] }
  0xb9   : > { %884 = vmatmul.mubr.f32.gmra.mrb[30].mxu1 %v357_v36  ;;  %663 = vmatprep.mubr.f32.mxu0 %v360_v37  ;;  %v414_v36 = vld [vmem:[%s2158_s26 + $0x3b8] sm:$0xff]  ;;  %v411_v37 = vld [vmem:[%s2158_s26 + $0x3a0] sm:$0xff] }
  0xba   : > { %888 = vmatprep.mubr.f32.mxu1 %v362_v38  ;;  %v413_v38 = vld [vmem:[%s2158_s26 + $0x3b0] sm:$0xff] }
  0xbc   : > { %664 = vmatmul.mubr.f32.gmra.mrb[32].mxu0 %v359_v39  ;;  %v416_v39 = vld [vmem:[%s2158_s26 + $0x3c8] sm:$0xff] }
  0xbd   : > { %889 = vmatmul.mubr.f32.gmra.mrb[32].mxu1 %v361_v40  ;;  %668 = vmatprep.mubr.f32.mxu0 %v364_v41  ;;  %v418_v40 = vld [vmem:[%s2158_s26 + $0x3d8] sm:$0xff]  ;;  %v415_v41 = vld [vmem:[%s2158_s26 + $0x3c0] sm:$0xff] }
  0xbe   : > { %893 = vmatprep.mubr.f32.mxu1 %v366_v42  ;;  %v417_v42 = vld [vmem:[%s2158_s26 + $0x3d0] sm:$0xff] }
  0xc0   : > { %669 = vmatmul.mubr.f32.gmra.mrb[34].mxu0 %v363_v0  ;;  %v420_v0 = vld [vmem:[%s2158_s26 + $0x3e8] sm:$0xff] }
  0xc1   : > { %894 = vmatmul.mubr.f32.gmra.mrb[34].mxu1 %v365_v43  ;;  %673 = vmatprep.mubr.f32.mxu0 %v368_v44  ;;  %v422_v43 = vld [vmem:[%s2158_s26 + $0x3f8] sm:$0xff]  ;;  %v419_v44 = vld [vmem:[%s2158_s26 + $0x3e0] sm:$0xff] }
  0xc2   : > { %898 = vmatprep.mubr.f32.mxu1 %v370_v45  ;;  %v421_v45 = vld [vmem:[%s2158_s26 + $0x3f0] sm:$0xff]  ;;  %s1561_s26 = sshll.u32 %s2154_s22, 8 }
  0xc3   : > { %s2644_s27 = scalar_lea.vmem [#allocation6], %s1561_s26 }
  0xc4   : > { %674 = vmatmul.mubr.f32.gmra.mrb[36].mxu0 %v367_v46  ;;  %s1451_s8 = sshll.u32 %s2644_s27, 4  ;;  %s2712_s8 = int_to_ptr.vmem [resolvable:$true] %s1451_s8 }
  0xc5   : > { %899 = vmatmul.mubr.f32.gmra.mrb[36].mxu1 %v369_v47  ;;  %678 = vmatprep.mubr.f32.mxu0 %v372_v48  ;;  %v487_v47 = vld [vmem:[#allocation2] sm:$0xff]  ;;  %s1925_s24 = scalar_lea.vmem %s2712_s8, 4096  ;;  %p1932_p6 = scmp.lt.s32.totalorder %s2712_s8, %s1930_s10 }
  0xc6   : > { %903 = vmatprep.mubr.f32.mxu1 %v374_v49  ;;  %p1926_p8 = scmp.ne.s32.totalorder %s2712_s8, %s1925_s24  ;;  %p1933_p13 = scmp.lt.s32.totalorder %s1931_s12, %s1925_s24 }
  0xc8   : > { %679 = vmatmul.mubr.f32.gmra.mrb[38].mxu0 %v371_v50  ;;  %p1927_p11 = pnand %p1926_p8, %p2776_p9  ;;  %p1934_p2 = por %p1933_p13, %p1932_p6 }
  0xc9   : > { %904 = vmatmul.mubr.f32.gmra.mrb[38].mxu1 %v373_v51  ;;  %683 = vmatprep.mubr.f32.mxu0 %v376_v52 }
  0xca   : > { %908 = vmatprep.mubr.f32.mxu1 %v378_v53  ;;  %p1928_p0 = pneg %p1927_p11 }
  0xcc   : > { %684 = vmatmul.mubr.f32.gmra.mrb[40].mxu0 %v375_v54  ;;  %v488_v54 = vld [vmem:[#allocation2 + $0x8] sm:$0xff]  ;;  %p1935_p5 = pnand %p1934_p2, %p1928_p0 }
  0xcd   : > { %909 = vmatmul.mubr.f32.gmra.mrb[40].mxu1 %v377_v55  ;;  %688 = vmatprep.mubr.f32.mxu0 %v380_v56 }
  0xce   : > { %913 = vmatprep.mubr.f32.mxu1 %v382_v57 }
  0xd0   : > { %689 = vmatmul.mubr.f32.gmra.mrb[42].mxu0 %v379_v59 }
  0xd1   : > { %914 = vmatmul.mubr.f32.gmra.mrb[42].mxu1 %v381_v60  ;;  %693 = vmatprep.mubr.f32.mxu0 %v384_v61  ;;  %v489_v61 = vld [vmem:[#allocation2 + $0x10] sm:$0xff] }
  0xd2   : > { %918 = vmatprep.mubr.f32.mxu1 %v386_v62 }
  0xd4   : > { %694 = vmatmul.mubr.f32.gmra.mrb[44].mxu0 %v383_v63 }
  0xd5   : > { %919 = vmatmul.mubr.f32.gmra.mrb[44].mxu1 %v385_v1  ;;  %698 = vmatprep.mubr.f32.mxu0 %v388_v2 }
  0xd6   : > { %923 = vmatprep.mubr.f32.mxu1 %v390_v5  ;;  %v490_v5 = vld [vmem:[#allocation2 + $0x18] sm:$0xff] }
  0xd8   : > { %699 = vmatmul.mubr.f32.gmra.mrb[46].mxu0 %v387_v7 }
  0xd9   : > { %924 = vmatmul.mubr.f32.gmra.mrb[46].mxu1 %v389_v8  ;;  %703 = vmatprep.mubr.f32.mxu0 %v392_v9 }
  0xda   : > { %928 = vmatprep.mubr.f32.mxu1 %v394_v12 }
  0xdc   : > { %704 = vmatmul.mubr.f32.gmra.mrb[48].mxu0 %v391_v14 }
  0xdd   : > { %929 = vmatmul.mubr.f32.gmra.mrb[48].mxu1 %v393_v15  ;;  %708 = vmatprep.mubr.f32.mxu0 %v396_v16 }
  0xde   : > { %933 = vmatprep.mubr.f32.mxu1 %v398_v19 }
  0xe0   : > { %709 = vmatmul.mubr.f32.gmra.mrb[50].mxu0 %v395_v21  ;;  %v492_v21 = vld [vmem:[#allocation2 + $0x28] sm:$0xff] }
  0xe1   : > { %934 = vmatmul.mubr.f32.gmra.mrb[50].mxu1 %v397_v22  ;;  %713 = vmatprep.mubr.f32.mxu0 %v400_v23 }
  0xe2   : > { %938 = vmatprep.mubr.f32.mxu1 %v402_v24 }
  0xe4   : > { %714 = vmatmul.mubr.f32.gmra.mrb[52].mxu0 %v399_v25 }
  0xe5   : > { %939 = vmatmul.mubr.f32.gmra.mrb[52].mxu1 %v401_v26  ;;  %718 = vmatprep.mubr.f32.mxu0 %v404_v27 }
  0xe6   : > { %943 = vmatprep.mubr.f32.mxu1 %v406_v28 }
  0xe8   : > { %719 = vmatmul.mubr.f32.gmra.mrb[54].mxu0 %v403_v29  ;;  %v493_v29 = vld [vmem:[#allocation2 + $0x30] sm:$0xff] }
  0xe9   : > { %944 = vmatmul.mubr.f32.gmra.mrb[54].mxu1 %v405_v30  ;;  %723 = vmatprep.mubr.f32.mxu0 %v408_v31 }
  0xea   : > { %948 = vmatprep.mubr.f32.mxu1 %v410_v32 }
  0xec   : > { %724 = vmatmul.mubr.f32.gmra.mrb[56].mxu0 %v407_v33 }
  0xed   : > { %949 = vmatmul.mubr.f32.gmra.mrb[56].mxu1 %v409_v34  ;;  %728 = vmatprep.mubr.f32.mxu0 %v412_v35 }
  0xee   : > { %953 = vmatprep.mubr.f32.mxu1 %v414_v36 }
  0xf0   : > { %729 = vmatmul.mubr.f32.gmra.mrb[58].mxu0 %v411_v37  ;;  %v494_v37 = vld [vmem:[#allocation2 + $0x38] sm:$0xff] }
  0xf1   : > { %954 = vmatmul.mubr.f32.gmra.mrb[58].mxu1 %v413_v38  ;;  %733 = vmatprep.mubr.f32.mxu0 %v416_v39 }
  0xf2   : > { %958 = vmatprep.mubr.f32.mxu1 %v418_v40 }
  0xf4   : > { %734 = vmatmul.mubr.f32.gmra.mrb[60].mxu0 %v415_v41 }
  0xf5   : > { %959 = vmatmul.mubr.f32.gmra.mrb[60].mxu1 %v417_v42  ;;  %738 = vmatprep.mubr.f32.mxu0 %v420_v0 }
  0xf6   : > { %963 = vmatprep.mubr.f32.mxu1 %v422_v43 }
  0xf8   : > { %739 = vmatmul.mubr.f32.gmra.mrb[62].mxu0 %v419_v44  ;;  %v495_v44 = vld [vmem:[#allocation2 + $0x40] sm:$0xff] }
  0xf9   : > { %964 = vmatmul.mubr.f32.gmra.mrb[62].mxu1 %v421_v45 }
 0x14f   : > { %v585_v46 = vpop.f32.mrb[0].mxu0 }
 0x150   : > { %v810_v48 = vpop.f32.mrb[0].mxu1  ;;  %v587_v49 = vpop.f32.mrb[1].mxu0 }
 0x151   : > { %v811_v50 = vadd.f32 %v810_v48, %v585_v46  ;;  %v812_v51 = vpop.f32.mrb[1].mxu1 }
 0x153   : > { %v969_v52 = vadd.f32 %v811_v50, %v487_v47  ;;  %v590_v53 = vpop.f32.mrb[2].mxu0 }
 0x154   : > { %v815_v55 = vpop.f32.mrb[2].mxu1  ;;  %v592_v56 = vpop.f32.mrb[3].mxu0 }
 0x155   : > { %1002 = vst.msk [vmem:[#allocation2] sm:$0xff] %vm262_vm0, %v969_v52  ;;  %v816_v57 = vadd.f32 %v815_v55, %v590_v53  ;;  %v817_v58 = vpop.f32.mrb[3].mxu1  ;;  %v496_v52 = vld [vmem:[#allocation2 + $0x48] sm:$0xff] }
 0x157   : > { %v970_v59 = vadd.f32 %v816_v57, %v488_v54  ;;  %v595_v60 = vpop.f32.mrb[4].mxu0 }
 0x158   : > { %v820_v62 = vpop.f32.mrb[4].mxu1  ;;  %v597_v63 = vpop.f32.mrb[5].mxu0 }
 0x159   : > { %1003 = vst.msk [vmem:[#allocation2 + $0x8] sm:$0xff] %vm262_vm0, %v970_v59  ;;  %v821_v1 = vadd.f32 %v820_v62, %v595_v60  ;;  %v822_v2 = vpop.f32.mrb[5].mxu1  ;;  %v497_v60 = vld [vmem:[#allocation2 + $0x50] sm:$0xff] }
 0x15b   : > { %v971_v3 = vadd.f32 %v821_v1, %v489_v61  ;;  %v600_v4 = vpop.f32.mrb[6].mxu0 }
 0x15c   : > { %v825_v6 = vpop.f32.mrb[6].mxu1  ;;  %v602_v7 = vpop.f32.mrb[7].mxu0  ;;  %v1037_v8 = vld [vmem:[#allocation2] sm:$0xff] }
 0x15d   : > { %1004 = vst.msk [vmem:[#allocation2 + $0x10] sm:$0xff] %vm262_vm0, %v971_v3  ;;  %v826_v9 = vadd.f32 %v825_v6, %v600_v4  ;;  %v827_v10 = vpop.f32.mrb[7].mxu1  ;;  %1659 = vmatprep.mubr.msk.f32.mxu0 %vm262_vm0, %v1037_v8 }
 0x15f   : > { %v972_v11 = vadd.f32 %v826_v9, %v490_v5  ;;  %v605_v12 = vpop.f32.mrb[8].mxu0  ;;  %v498_v5 = vld [vmem:[#allocation2 + $0x58] sm:$0xff] }
 0x160   : > { %v830_v14 = vpop.f32.mrb[8].mxu1  ;;  %v607_v15 = vpop.f32.mrb[9].mxu0  ;;  %v1038_v16 = vld [vmem:[#allocation2 + $0x8] sm:$0xff] }
 0x161   : > { %1005 = vst.msk [vmem:[#allocation2 + $0x18] sm:$0xff] %vm262_vm0, %v972_v11  ;;  %v831_v17 = vadd.f32 %v830_v14, %v605_v12  ;;  %v832_v18 = vpop.f32.mrb[9].mxu1  ;;  %1660 = vmatmul.mubr.msk.f32.vlgmr.msra.gmra.mrb[64].mxu0 %vm262_vm0, %v1038_v16 }
 0x163   : > { %v973_v19 = vadd.f32 %v831_v17, %v491_v13  ;;  %v610_v20 = vpop.f32.mrb[10].mxu0  ;;  %v499_v13 = vld [vmem:[#allocation2 + $0x60] sm:$0xff] }
 0x164   : > { %v835_v22 = vpop.f32.mrb[10].mxu1  ;;  %v612_v23 = vpop.f32.mrb[11].mxu0  ;;  %v1039_v24 = vld [vmem:[#allocation2 + $0x10] sm:$0xff] }
 0x165   : > { %1006 = vst.msk [vmem:[#allocation2 + $0x20] sm:$0xff] %vm262_vm0, %v973_v19  ;;  %v836_v25 = vadd.f32 %v835_v22, %v610_v20  ;;  %v837_v26 = vpop.f32.mrb[11].mxu1  ;;  %1662 = vmatprep.mubr.msk.f32.mxu0 %vm262_vm0, %v1039_v24 }
 0x167   : > { %v974_v27 = vadd.f32 %v836_v25, %v492_v21  ;;  %v615_v28 = vpop.f32.mrb[12].mxu0  ;;  %v500_v21 = vld [vmem:[#allocation2 + $0x68] sm:$0xff] }
 0x168   : > { %v840_v30 = vpop.f32.mrb[12].mxu1  ;;  %v617_v31 = vpop.f32.mrb[13].mxu0  ;;  %v1040_v32 = vld [vmem:[#allocation2 + $0x18] sm:$0xff] }
 0x169   : > { %1007 = vst.msk [vmem:[#allocation2 + $0x28] sm:$0xff] %vm262_vm0, %v974_v27  ;;  %v841_v33 = vadd.f32 %v840_v30, %v615_v28  ;;  %v842_v34 = vpop.f32.mrb[13].mxu1  ;;  %1663 = vmatmul.mubr.msk.f32.gmra.mrb[66].mxu0 %vm262_vm0, %v1040_v32 }
 0x16b   : > { %v975_v35 = vadd.f32 %v841_v33, %v493_v29  ;;  %v620_v36 = vpop.f32.mrb[14].mxu0  ;;  %v501_v29 = vld [vmem:[#allocation2 + $0x70] sm:$0xff] }
 0x16c   : > { %v845_v38 = vpop.f32.mrb[14].mxu1  ;;  %v622_v39 = vpop.f32.mrb[15].mxu0  ;;  %v1041_v40 = vld [vmem:[#allocation2 + $0x20] sm:$0xff] }
 0x16d   : > { %1008 = vst.msk [vmem:[#allocation2 + $0x30] sm:$0xff] %vm262_vm0, %v975_v35  ;;  %v846_v41 = vadd.f32 %v845_v38, %v620_v36  ;;  %v847_v42 = vpop.f32.mrb[15].mxu1  ;;  %1665 = vmatprep.mubr.msk.f32.mxu0 %vm262_vm0, %v1041_v40 }
 0x16f   : > { %v976_v0 = vadd.f32 %v846_v41, %v494_v37  ;;  %v625_v43 = vpop.f32.mrb[16].mxu0  ;;  %v502_v37 = vld [vmem:[#allocation2 + $0x78] sm:$0xff] }
 0x170   : > { %v850_v45 = vpop.f32.mrb[16].mxu1  ;;  %v627_v46 = vpop.f32.mrb[17].mxu0  ;;  %v1042_v47 = vld [vmem:[#allocation2 + $0x28] sm:$0xff] }
 0x171   : > { %1009 = vst.msk [vmem:[#allocation2 + $0x38] sm:$0xff] %vm262_vm0, %v976_v0  ;;  %v851_v48 = vadd.f32 %v850_v45, %v625_v43  ;;  %v852_v49 = vpop.f32.mrb[17].mxu1  ;;  %1666 = vmatmul.mubr.msk.f32.gmra.mrb[68].mxu0 %vm262_vm0, %v1042_v47 }
 0x173   : > { %v977_v50 = vadd.f32 %v851_v48, %v495_v44  ;;  %v630_v51 = vpop.f32.mrb[18].mxu0  ;;  %v503_v44 = vld [vmem:[#allocation2 + $0x80] sm:$0xff] }
 0x174   : > { %v855_v53 = vpop.f32.mrb[18].mxu1  ;;  %v632_v54 = vpop.f32.mrb[19].mxu0  ;;  %v1043_v55 = vld [vmem:[#allocation2 + $0x30] sm:$0xff] }
 0x175   : > { %1010 = vst.msk [vmem:[#allocation2 + $0x40] sm:$0xff] %vm262_vm0, %v977_v50  ;;  %v856_v56 = vadd.f32 %v855_v53, %v630_v51  ;;  %v857_v57 = vpop.f32.mrb[19].mxu1  ;;  %1668 = vmatprep.mubr.msk.f32.mxu0 %vm262_vm0, %v1043_v55 }
 0x177   : > { %v978_v58 = vadd.f32 %v856_v56, %v496_v52  ;;  %v635_v59 = vpop.f32.mrb[20].mxu0  ;;  %v504_v52 = vld [vmem:[#allocation2 + $0x88] sm:$0xff] }
 0x178   : > { %v860_v61 = vpop.f32.mrb[20].mxu1  ;;  %v637_v62 = vpop.f32.mrb[21].mxu0  ;;  %v1044_v63 = vld [vmem:[#allocation2 + $0x38] sm:$0xff] }
 0x179   : > { %1011 = vst.msk [vmem:[#allocation2 + $0x48] sm:$0xff] %vm262_vm0, %v978_v58  ;;  %v861_v1 = vadd.f32 %v860_v61, %v635_v59  ;;  %v862_v2 = vpop.f32.mrb[21].mxu1  ;;  %1669 = vmatmul.mubr.msk.f32.gmra.mrb[70].mxu0 %vm262_vm0, %v1044_v63 }
 0x17b   : > { %v979_v3 = vadd.f32 %v861_v1, %v497_v60  ;;  %v640_v4 = vpop.f32.mrb[22].mxu0  ;;  %v505_v60 = vld [vmem:[#allocation2 + $0x90] sm:$0xff] }
 0x17c   : > { %v865_v6 = vpop.f32.mrb[22].mxu1  ;;  %v642_v7 = vpop.f32.mrb[23].mxu0  ;;  %v1045_v8 = vld [vmem:[#allocation2 + $0x40] sm:$0xff] }
 0x17d   : > { %1012 = vst.msk [vmem:[#allocation2 + $0x50] sm:$0xff] %vm262_vm0, %v979_v3  ;;  %v866_v9 = vadd.f32 %v865_v6, %v640_v4  ;;  %v867_v10 = vpop.f32.mrb[23].mxu1  ;;  %1671 = vmatprep.mubr.msk.f32.mxu0 %vm262_vm0, %v1045_v8 }
 0x17f   : > { %v980_v11 = vadd.f32 %v866_v9, %v498_v5  ;;  %v645_v12 = vpop.f32.mrb[24].mxu0  ;;  %v506_v5 = vld [vmem:[#allocation2 + $0x98] sm:$0xff] }
 0x180   : > { %v870_v14 = vpop.f32.mrb[24].mxu1  ;;  %v647_v15 = vpop.f32.mrb[25].mxu0  ;;  %v1046_v16 = vld [vmem:[#allocation2 + $0x48] sm:$0xff] }
 0x181   : > { %1013 = vst.msk [vmem:[#allocation2 + $0x58] sm:$0xff] %vm262_vm0, %v980_v11  ;;  %v871_v17 = vadd.f32 %v870_v14, %v645_v12  ;;  %v872_v18 = vpop.f32.mrb[25].mxu1  ;;  %1672 = vmatmul.mubr.msk.f32.gmra.mrb[72].mxu0 %vm262_vm0, %v1046_v16 }
 0x183   : > { %v981_v19 = vadd.f32 %v871_v17, %v499_v13  ;;  %v650_v20 = vpop.f32.mrb[26].mxu0  ;;  %v507_v13 = vld [vmem:[#allocation2 + $0xa0] sm:$0xff] }
 0x184   : > { %v875_v22 = vpop.f32.mrb[26].mxu1  ;;  %v652_v23 = vpop.f32.mrb[27].mxu0  ;;  %v1047_v24 = vld [vmem:[#allocation2 + $0x50] sm:$0xff] }
 0x185   : > { %1014 = vst.msk [vmem:[#allocation2 + $0x60] sm:$0xff] %vm262_vm0, %v981_v19  ;;  %v876_v25 = vadd.f32 %v875_v22, %v650_v20  ;;  %v877_v26 = vpop.f32.mrb[27].mxu1  ;;  %1674 = vmatprep.mubr.msk.f32.mxu0 %vm262_vm0, %v1047_v24 }
 0x187   : > { %v982_v27 = vadd.f32 %v876_v25, %v500_v21  ;;  %v655_v28 = vpop.f32.mrb[28].mxu0  ;;  %v508_v21 = vld [vmem:[#allocation2 + $0xa8] sm:$0xff] }
 0x188   : > { %v880_v30 = vpop.f32.mrb[28].mxu1  ;;  %v657_v31 = vpop.f32.mrb[29].mxu0  ;;  %v1048_v32 = vld [vmem:[#allocation2 + $0x58] sm:$0xff] }
 0x189   : > { %1015 = vst.msk [vmem:[#allocation2 + $0x68] sm:$0xff] %vm262_vm0, %v982_v27  ;;  %v881_v33 = vadd.f32 %v880_v30, %v655_v28  ;;  %v882_v34 = vpop.f32.mrb[29].mxu1  ;;  %1675 = vmatmul.mubr.msk.f32.gmra.mrb[74].mxu0 %vm262_vm0, %v1048_v32 }
 0x18b   : > { %v983_v35 = vadd.f32 %v881_v33, %v501_v29  ;;  %v660_v36 = vpop.f32.mrb[30].mxu0  ;;  %v509_v29 = vld [vmem:[#allocation2 + $0xb0] sm:$0xff] }
 0x18c   : > { %v885_v38 = vpop.f32.mrb[30].mxu1  ;;  %v662_v39 = vpop.f32.mrb[31].mxu0  ;;  %v1049_v40 = vld [vmem:[#allocation2 + $0x60] sm:$0xff] }
 0x18d   : > { %1016 = vst.msk [vmem:[#allocation2 + $0x70] sm:$0xff] %vm262_vm0, %v983_v35  ;;  %v886_v41 = vadd.f32 %v885_v38, %v660_v36  ;;  %v887_v42 = vpop.f32.mrb[31].mxu1  ;;  %1677 = vmatprep.mubr.msk.f32.mxu0 %vm262_vm0, %v1049_v40 }
 0x18f   : > { %v984_v0 = vadd.f32 %v886_v41, %v502_v37  ;;  %v665_v43 = vpop.f32.mrb[32].mxu0  ;;  %v510_v37 = vld [vmem:[#allocation2 + $0xb8] sm:$0xff] }
 0x190   : > { %v890_v45 = vpop.f32.mrb[32].mxu1  ;;  %v667_v46 = vpop.f32.mrb[33].mxu0  ;;  %v1050_v47 = vld [vmem:[#allocation2 + $0x68] sm:$0xff] }
 0x191   : > { %1017 = vst.msk [vmem:[#allocation2 + $0x78] sm:$0xff] %vm262_vm0, %v984_v0  ;;  %v891_v48 = vadd.f32 %v890_v45, %v665_v43  ;;  %v892_v49 = vpop.f32.mrb[33].mxu1  ;;  %1678 = vmatmul.mubr.msk.f32.gmra.mrb[76].mxu0 %vm262_vm0, %v1050_v47 }
 0x193   : > { %v985_v50 = vadd.f32 %v891_v48, %v503_v44  ;;  %v670_v51 = vpop.f32.mrb[34].mxu0  ;;  %v511_v44 = vld [vmem:[#allocation2 + $0xc0] sm:$0xff] }
 0x194   : > { %v895_v53 = vpop.f32.mrb[34].mxu1  ;;  %v672_v54 = vpop.f32.mrb[35].mxu0  ;;  %v1051_v55 = vld [vmem:[#allocation2 + $0x70] sm:$0xff] }
 0x195   : > { %1018 = vst.msk [vmem:[#allocation2 + $0x80] sm:$0xff] %vm262_vm0, %v985_v50  ;;  %v896_v56 = vadd.f32 %v895_v53, %v670_v51  ;;  %v897_v57 = vpop.f32.mrb[35].mxu1  ;;  %1680 = vmatprep.mubr.msk.f32.mxu0 %vm262_vm0, %v1051_v55 }
 0x197   : > { %v986_v58 = vadd.f32 %v896_v56, %v504_v52  ;;  %v675_v59 = vpop.f32.mrb[36].mxu0  ;;  %v512_v52 = vld [vmem:[#allocation2 + $0xc8] sm:$0xff] }
 0x198   : > { %v900_v61 = vpop.f32.mrb[36].mxu1  ;;  %v677_v62 = vpop.f32.mrb[37].mxu0  ;;  %v1052_v63 = vld [vmem:[#allocation2 + $0x78] sm:$0xff] }
 0x199   : > { %1019 = vst.msk [vmem:[#allocation2 + $0x88] sm:$0xff] %vm262_vm0, %v986_v58  ;;  %v901_v1 = vadd.f32 %v900_v61, %v675_v59  ;;  %v902_v2 = vpop.f32.mrb[37].mxu1  ;;  %1681 = vmatmul.mubr.msk.f32.gmra.mrb[78].mxu0 %vm262_vm0, %v1052_v63 }
 0x19b   : > { %v987_v3 = vadd.f32 %v901_v1, %v505_v60  ;;  %v680_v4 = vpop.f32.mrb[38].mxu0  ;;  %v513_v60 = vld [vmem:[#allocation2 + $0xd0] sm:$0xff] }
 0x19c   : > { %v905_v6 = vpop.f32.mrb[38].mxu1  ;;  %v682_v7 = vpop.f32.mrb[39].mxu0  ;;  %v1053_v8 = vld [vmem:[#allocation2 + $0x80] sm:$0xff] }
 0x19d   : > { %1020 = vst.msk [vmem:[#allocation2 + $0x90] sm:$0xff] %vm262_vm0, %v987_v3  ;;  %v906_v9 = vadd.f32 %v905_v6, %v680_v4  ;;  %v907_v10 = vpop.f32.mrb[39].mxu1  ;;  %1683 = vmatprep.mubr.msk.f32.mxu1 %vm262_vm0, %v1053_v8 }
 0x19f   : > { %v988_v11 = vadd.f32 %v906_v9, %v506_v5  ;;  %v685_v12 = vpop.f32.mrb[40].mxu0  ;;  %v514_v5 = vld [vmem:[#allocation2 + $0xd8] sm:$0xff] }
 0x1a0   : > { %v910_v14 = vpop.f32.mrb[40].mxu1  ;;  %v687_v15 = vpop.f32.mrb[41].mxu0  ;;  %v1054_v16 = vld [vmem:[#allocation2 + $0x88] sm:$0xff] }
 0x1a1   : > { %1021 = vst.msk [vmem:[#allocation2 + $0x98] sm:$0xff] %vm262_vm0, %v988_v11  ;;  %v911_v17 = vadd.f32 %v910_v14, %v685_v12  ;;  %v912_v18 = vpop.f32.mrb[41].mxu1  ;;  %1684 = vmatmul.mubr.msk.f32.vlgmr.msra.gmra.mrb[64].mxu1 %vm262_vm0, %v1054_v16 }
 0x1a3   : > { %v989_v19 = vadd.f32 %v911_v17, %v507_v13  ;;  %v690_v20 = vpop.f32.mrb[42].mxu0  ;;  %v515_v13 = vld [vmem:[#allocation2 + $0xe0] sm:$0xff] }
 0x1a4   : > { %v915_v22 = vpop.f32.mrb[42].mxu1  ;;  %v692_v23 = vpop.f32.mrb[43].mxu0  ;;  %v1055_v24 = vld [vmem:[#allocation2 + $0x90] sm:$0xff] }
 0x1a5   : > { %1022 = vst.msk [vmem:[#allocation2 + $0xa0] sm:$0xff] %vm262_vm0, %v989_v19  ;;  %v916_v25 = vadd.f32 %v915_v22, %v690_v20  ;;  %v917_v26 = vpop.f32.mrb[43].mxu1  ;;  %1686 = vmatprep.mubr.msk.f32.mxu1 %vm262_vm0, %v1055_v24 }
 0x1a7   : > { %v990_v27 = vadd.f32 %v916_v25, %v508_v21  ;;  %v695_v28 = vpop.f32.mrb[44].mxu0  ;;  %v516_v21 = vld [vmem:[#allocation2 + $0xe8] sm:$0xff] }
 0x1a8   : > { %v920_v30 = vpop.f32.mrb[44].mxu1  ;;  %v697_v31 = vpop.f32.mrb[45].mxu0  ;;  %v1056_v32 = vld [vmem:[#allocation2 + $0x98] sm:$0xff] }
 0x1a9   : > { %1023 = vst.msk [vmem:[#allocation2 + $0xa8] sm:$0xff] %vm262_vm0, %v990_v27  ;;  %v921_v33 = vadd.f32 %v920_v30, %v695_v28  ;;  %v922_v34 = vpop.f32.mrb[45].mxu1  ;;  %1687 = vmatmul.mubr.msk.f32.gmra.mrb[66].mxu1 %vm262_vm0, %v1056_v32 }
 0x1ab   : > { %v991_v35 = vadd.f32 %v921_v33, %v509_v29  ;;  %v700_v36 = vpop.f32.mrb[46].mxu0  ;;  %v517_v29 = vld [vmem:[#allocation2 + $0xf0] sm:$0xff] }
 0x1ac   : > { %v925_v38 = vpop.f32.mrb[46].mxu1  ;;  %v702_v39 = vpop.f32.mrb[47].mxu0  ;;  %v1057_v40 = vld [vmem:[#allocation2 + $0xa0] sm:$0xff] }
 0x1ad   : > { %1024 = vst.msk [vmem:[#allocation2 + $0xb0] sm:$0xff] %vm262_vm0, %v991_v35  ;;  %v926_v41 = vadd.f32 %v925_v38, %v700_v36  ;;  %v927_v42 = vpop.f32.mrb[47].mxu1  ;;  %1689 = vmatprep.mubr.msk.f32.mxu1 %vm262_vm0, %v1057_v40 }
 0x1af   : > { %v992_v0 = vadd.f32 %v926_v41, %v510_v37  ;;  %v705_v43 = vpop.f32.mrb[48].mxu0  ;;  %v518_v37 = vld [vmem:[#allocation2 + $0xf8] sm:$0xff] }
 0x1b0   : > { %v930_v45 = vpop.f32.mrb[48].mxu1  ;;  %v707_v46 = vpop.f32.mrb[49].mxu0  ;;  %v1058_v47 = vld [vmem:[#allocation2 + $0xa8] sm:$0xff] }
 0x1b1   : > { %1025 = vst.msk [vmem:[#allocation2 + $0xb8] sm:$0xff] %vm262_vm0, %v992_v0  ;;  %v931_v48 = vadd.f32 %v930_v45, %v705_v43  ;;  %v932_v49 = vpop.f32.mrb[49].mxu1  ;;  %1690 = vmatmul.mubr.msk.f32.gmra.mrb[68].mxu1 %vm262_vm0, %v1058_v47  ;;  %v2640_v46 = vld [vmem:[%s2767_s3] ss:$0 sm:$0xff] }
 0x1b3   : > { %v993_v50 = vadd.f32 %v931_v48, %v511_v44  ;;  %v710_v51 = vpop.f32.mrb[50].mxu0 }
 0x1b4   : > { %v935_v53 = vpop.f32.mrb[50].mxu1  ;;  %v712_v54 = vpop.f32.mrb[51].mxu0  ;;  %v1059_v55 = vld [vmem:[#allocation2 + $0xb0] sm:$0xff] }
 0x1b5   : > { %1026 = vst.msk [vmem:[#allocation2 + $0xc0] sm:$0xff] %vm262_vm0, %v993_v50  ;;  %v936_v56 = vadd.f32 %v935_v53, %v710_v51  ;;  %v937_v57 = vpop.f32.mrb[51].mxu1  ;;  %1692 = vmatprep.mubr.msk.f32.mxu1 %vm262_vm0, %v1059_v55 }
 0x1b7   : > { %v994_v58 = vadd.f32 %v936_v56, %v512_v52  ;;  %v715_v59 = vpop.f32.mrb[52].mxu0 }
 0x1b8   : > { %v940_v61 = vpop.f32.mrb[52].mxu1  ;;  %v717_v62 = vpop.f32.mrb[53].mxu0  ;;  %v1060_v63 = vld [vmem:[#allocation2 + $0xb8] sm:$0xff] }
 0x1b9   : > { %1027 = vst.msk [vmem:[#allocation2 + $0xc8] sm:$0xff] %vm262_vm0, %v994_v58  ;;  %v941_v1 = vadd.f32 %v940_v61, %v715_v59  ;;  %v942_v2 = vpop.f32.mrb[53].mxu1  ;;  %1693 = vmatmul.mubr.msk.f32.gmra.mrb[70].mxu1 %vm262_vm0, %v1060_v63 }
 0x1bb   : > { %v995_v3 = vadd.f32 %v941_v1, %v513_v60  ;;  %v720_v4 = vpop.f32.mrb[54].mxu0 }
 0x1bc   : > { %v945_v6 = vpop.f32.mrb[54].mxu1  ;;  %v722_v7 = vpop.f32.mrb[55].mxu0  ;;  %v1061_v8 = vld [vmem:[#allocation2 + $0xc0] sm:$0xff] }
 0x1bd   : > { %1028 = vst.msk [vmem:[#allocation2 + $0xd0] sm:$0xff] %vm262_vm0, %v995_v3  ;;  %v946_v9 = vadd.f32 %v945_v6, %v720_v4  ;;  %v947_v10 = vpop.f32.mrb[55].mxu1  ;;  %1695 = vmatprep.mubr.msk.f32.mxu1 %vm262_vm0, %v1061_v8 }
 0x1bf   : > { %v996_v11 = vadd.f32 %v946_v9, %v514_v5  ;;  %v725_v12 = vpop.f32.mrb[56].mxu0 }
 0x1c0   : > { %v950_v14 = vpop.f32.mrb[56].mxu1  ;;  %v727_v15 = vpop.f32.mrb[57].mxu0  ;;  %v1062_v16 = vld [vmem:[#allocation2 + $0xc8] sm:$0xff] }
 0x1c1   : > { %1029 = vst.msk [vmem:[#allocation2 + $0xd8] sm:$0xff] %vm262_vm0, %v996_v11  ;;  %v951_v17 = vadd.f32 %v950_v14, %v725_v12  ;;  %v952_v18 = vpop.f32.mrb[57].mxu1  ;;  %1696 = vmatmul.mubr.msk.f32.gmra.mrb[72].mxu1 %vm262_vm0, %v1062_v16 }
 0x1c3   : > { %v997_v19 = vadd.f32 %v951_v17, %v515_v13  ;;  %v730_v20 = vpop.f32.mrb[58].mxu0 }
 0x1c4   : > { %v955_v22 = vpop.f32.mrb[58].mxu1  ;;  %v732_v23 = vpop.f32.mrb[59].mxu0  ;;  %v1063_v24 = vld [vmem:[#allocation2 + $0xd0] sm:$0xff] }
 0x1c5   : > { %1030 = vst.msk [vmem:[#allocation2 + $0xe0] sm:$0xff] %vm262_vm0, %v997_v19  ;;  %v956_v25 = vadd.f32 %v955_v22, %v730_v20  ;;  %v957_v26 = vpop.f32.mrb[59].mxu1  ;;  %1698 = vmatprep.mubr.msk.f32.mxu1 %vm262_vm0, %v1063_v24 }
 0x1c7   : > { %v998_v27 = vadd.f32 %v956_v25, %v516_v21  ;;  %v735_v28 = vpop.f32.mrb[60].mxu0 }
 0x1c8   : > { %v960_v30 = vpop.f32.mrb[60].mxu1  ;;  %v737_v31 = vpop.f32.mrb[61].mxu0  ;;  %v1064_v32 = vld [vmem:[#allocation2 + $0xd8] sm:$0xff] }
 0x1c9   : > { %1031 = vst.msk [vmem:[#allocation2 + $0xe8] sm:$0xff] %vm262_vm0, %v998_v27  ;;  %v961_v33 = vadd.f32 %v960_v30, %v735_v28  ;;  %v962_v34 = vpop.f32.mrb[61].mxu1  ;;  %1699 = vmatmul.mubr.msk.f32.gmra.mrb[74].mxu1 %vm262_vm0, %v1064_v32 }
 0x1cb   : > { %v999_v35 = vadd.f32 %v961_v33, %v517_v29  ;;  %v740_v36 = vpop.f32.mrb[62].mxu0 }
 0x1cc   : > { %v965_v38 = vpop.f32.mrb[62].mxu1  ;;  %v742_v39 = vpop.f32.mrb[63].mxu0  ;;  %v1065_v40 = vld [vmem:[#allocation2 + $0xe0] sm:$0xff] }
 0x1cd   : > { %1032 = vst.msk [vmem:[#allocation2 + $0xf0] sm:$0xff] %vm262_vm0, %v999_v35  ;;  %v966_v41 = vadd.f32 %v965_v38, %v740_v36  ;;  %v967_v42 = vpop.f32.mrb[63].mxu1  ;;  %1701 = vmatprep.mubr.msk.f32.mxu1 %vm262_vm0, %v1065_v40 }
 0x1cf   : > { %v1000_v0 = vadd.f32 %v966_v41, %v518_v37 }
 0x1d0   : > { %v1066_v43 = vld [vmem:[#allocation2 + $0xe8] sm:$0xff] }
 0x1d1   : > { %1033 = vst.msk [vmem:[#allocation2 + $0xf8] sm:$0xff] %vm262_vm0, %v1000_v0  ;;  %1702 = vmatmul.mubr.msk.f32.gmra.mrb[76].mxu1 %vm262_vm0, %v1066_v43 }
 0x1d4   : > { %v1067_v44 = vld [vmem:[#allocation2 + $0xf0] sm:$0xff] }
 0x1d5   : > { %1704 = vmatprep.mubr.msk.f32.mxu1 %vm262_vm0, %v1067_v44 }
 0x1d8   : > { %v1068_v45 = vld [vmem:[#allocation2 + $0xf8] sm:$0xff] }
 0x1d9   : > { %1705 = vmatmul.mubr.msk.f32.gmra.mrb[78].mxu1 %vm262_vm0, %v1068_v45 }
 0x234   : > { %v1661_v47 = vpop.f32.mrb[64].mxu0 }
 0x235   : > { %v1252_v48 = vadd.f32 %v1661_v47, %v2640_v46  ;;  %v1246_v49 = vpop.f32.mrb[65].mxu0 }
 0x236   : > { %v1247_v50 = vadd.f32 %v2640_v46, %v1246_v49 }
 0x237   : > { %1406 = vst [vmem:[%s2644_s27 + $0x8] sm:$0xff] %v1252_v48 }
 0x238   : > { %1405 = vst [vmem:[%s2644_s27] sm:$0xff] %v1247_v50 }
 0x23c   : > { %v1664_v51 = vpop.f32.mrb[66].mxu0 }
 0x23d   : > { %v1262_v52 = vadd.f32 %v1664_v51, %v2640_v46  ;;  %v1256_v53 = vpop.f32.mrb[67].mxu0 }
 0x23e   : > { %v1257_v54 = vadd.f32 %v2640_v46, %v1256_v53 }
 0x23f   : > { %1408 = vst [vmem:[%s2644_s27 + $0x18] sm:$0xff] %v1262_v52 }
 0x240   : > { %1407 = vst [vmem:[%s2644_s27 + $0x10] sm:$0xff] %v1257_v54 }
 0x244   : > { %v1667_v55 = vpop.f32.mrb[68].mxu0 }
 0x245   : > { %v1272_v56 = vadd.f32 %v1667_v55, %v2640_v46  ;;  %v1266_v57 = vpop.f32.mrb[69].mxu0 }
 0x246   : > { %v1267_v58 = vadd.f32 %v2640_v46, %v1266_v57 }
 0x247   : > { %1410 = vst [vmem:[%s2644_s27 + $0x28] sm:$0xff] %v1272_v56 }
 0x248   : > { %1409 = vst [vmem:[%s2644_s27 + $0x20] sm:$0xff] %v1267_v58 }
 0x24c   : > { %v1670_v59 = vpop.f32.mrb[70].mxu0 }
 0x24d   : > { %v1282_v60 = vadd.f32 %v1670_v59, %v2640_v46  ;;  %v1276_v61 = vpop.f32.mrb[71].mxu0 }
 0x24e   : > { %v1277_v62 = vadd.f32 %v2640_v46, %v1276_v61 }
 0x24f   : > { %1412 = vst [vmem:[%s2644_s27 + $0x38] sm:$0xff] %v1282_v60 }
 0x250   : > { %1411 = vst [vmem:[%s2644_s27 + $0x30] sm:$0xff] %v1277_v62 }
 0x254   : > { %v1673_v63 = vpop.f32.mrb[72].mxu0 }
 0x255   : > { %v1292_v1 = vadd.f32 %v1673_v63, %v2640_v46  ;;  %v1286_v2 = vpop.f32.mrb[73].mxu0 }
 0x256   : > { %v1287_v3 = vadd.f32 %v2640_v46, %v1286_v2 }
 0x257   : > { %1414 = vst [vmem:[%s2644_s27 + $0x48] sm:$0xff] %v1292_v1 }
 0x258   : > { %1413 = vst [vmem:[%s2644_s27 + $0x40] sm:$0xff] %v1287_v3 }
 0x25c   : > { %v1676_v4 = vpop.f32.mrb[74].mxu0 }
 0x25d   : > { %v1302_v5 = vadd.f32 %v1676_v4, %v2640_v46  ;;  %v1296_v6 = vpop.f32.mrb[75].mxu0 }
 0x25e   : > { %v1297_v7 = vadd.f32 %v2640_v46, %v1296_v6 }
 0x25f   : > { %1416 = vst [vmem:[%s2644_s27 + $0x58] sm:$0xff] %v1302_v5 }
 0x260   : > { %1415 = vst [vmem:[%s2644_s27 + $0x50] sm:$0xff] %v1297_v7 }
 0x264   : > { %v1679_v8 = vpop.f32.mrb[76].mxu0 }
 0x265   : > { %v1312_v9 = vadd.f32 %v1679_v8, %v2640_v46  ;;  %v1306_v10 = vpop.f32.mrb[77].mxu0 }
 0x266   : > { %v1307_v11 = vadd.f32 %v2640_v46, %v1306_v10 }
 0x267   : > { %1418 = vst [vmem:[%s2644_s27 + $0x68] sm:$0xff] %v1312_v9 }
 0x268   : > { %1417 = vst [vmem:[%s2644_s27 + $0x60] sm:$0xff] %v1307_v11 }
 0x26c   : > { %v1682_v12 = vpop.f32.mrb[78].mxu0 }
 0x26d   : > { %v1322_v13 = vadd.f32 %v1682_v12, %v2640_v46  ;;  %v1316_v14 = vpop.f32.mrb[79].mxu0 }
 0x26e   : > { %v1317_v15 = vadd.f32 %v2640_v46, %v1316_v14 }
 0x26f   : > { %1420 = vst [vmem:[%s2644_s27 + $0x78] sm:$0xff] %v1322_v13 }
 0x270   : > { %1419 = vst [vmem:[%s2644_s27 + $0x70] sm:$0xff] %v1317_v15 }
 0x274   : > { %v1685_v16 = vpop.f32.mrb[64].mxu1 }
 0x275   : > { %v1332_v17 = vadd.f32 %v1685_v16, %v2640_v46  ;;  %v1326_v18 = vpop.f32.mrb[65].mxu1 }
 0x276   : > { %v1327_v19 = vadd.f32 %v2640_v46, %v1326_v18 }
 0x277   : > { %1422 = vst [vmem:[%s2644_s27 + $0x88] sm:$0xff] %v1332_v17 }
 0x278   : > { %1421 = vst [vmem:[%s2644_s27 + $0x80] sm:$0xff] %v1327_v19 }
 0x27c   : > { %v1688_v20 = vpop.f32.mrb[66].mxu1 }
 0x27d   : > { %v1342_v21 = vadd.f32 %v1688_v20, %v2640_v46  ;;  %v1336_v22 = vpop.f32.mrb[67].mxu1 }
 0x27e   : > { %v1337_v23 = vadd.f32 %v2640_v46, %v1336_v22 }
 0x27f   : > { %1424 = vst [vmem:[%s2644_s27 + $0x98] sm:$0xff] %v1342_v21 }
 0x280   : > { %1423 = vst [vmem:[%s2644_s27 + $0x90] sm:$0xff] %v1337_v23 }
 0x284   : > { %v1691_v24 = vpop.f32.mrb[68].mxu1 }
 0x285   : > { %v1352_v25 = vadd.f32 %v1691_v24, %v2640_v46  ;;  %v1346_v26 = vpop.f32.mrb[69].mxu1 }
 0x286   : > { %v1347_v27 = vadd.f32 %v2640_v46, %v1346_v26 }
 0x287   : > { %1426 = vst [vmem:[%s2644_s27 + $0xa8] sm:$0xff] %v1352_v25 }
 0x288   : > { %1425 = vst [vmem:[%s2644_s27 + $0xa0] sm:$0xff] %v1347_v27 }
 0x28c   : > { %v1694_v28 = vpop.f32.mrb[70].mxu1 }
 0x28d   : > { %v1362_v29 = vadd.f32 %v1694_v28, %v2640_v46  ;;  %v1356_v30 = vpop.f32.mrb[71].mxu1 }
 0x28e   : > { %v1357_v31 = vadd.f32 %v2640_v46, %v1356_v30 }
 0x28f   : > { %1428 = vst [vmem:[%s2644_s27 + $0xb8] sm:$0xff] %v1362_v29 }
 0x290   : > { %1427 = vst [vmem:[%s2644_s27 + $0xb0] sm:$0xff] %v1357_v31 }
 0x294   : > { %v1697_v32 = vpop.f32.mrb[72].mxu1 }
 0x295   : > { %v1372_v33 = vadd.f32 %v1697_v32, %v2640_v46  ;;  %v1366_v34 = vpop.f32.mrb[73].mxu1 }
 0x296   : > { %v1367_v35 = vadd.f32 %v2640_v46, %v1366_v34 }
 0x297   : > { %1430 = vst [vmem:[%s2644_s27 + $0xc8] sm:$0xff] %v1372_v33 }
 0x298   : > { %1429 = vst [vmem:[%s2644_s27 + $0xc0] sm:$0xff] %v1367_v35 }
 0x29c   : > { %v1700_v36 = vpop.f32.mrb[74].mxu1 }
 0x29d   : > { %v1382_v37 = vadd.f32 %v1700_v36, %v2640_v46  ;;  %v1376_v38 = vpop.f32.mrb[75].mxu1 }
 0x29e   : > { %v1377_v39 = vadd.f32 %v2640_v46, %v1376_v38 }
 0x29f   : > { %1432 = vst [vmem:[%s2644_s27 + $0xd8] sm:$0xff] %v1382_v37 }
 0x2a0   : > { %1431 = vst [vmem:[%s2644_s27 + $0xd0] sm:$0xff] %v1377_v39 }
 0x2a4   : > { %v1703_v40 = vpop.f32.mrb[76].mxu1 }
 0x2a5   : > { %v1392_v41 = vadd.f32 %v1703_v40, %v2640_v46  ;;  %v1386_v42 = vpop.f32.mrb[77].mxu1 }
 0x2a6   : > { %v1387_v0 = vadd.f32 %v2640_v46, %v1386_v42 }
 0x2a7   : > { %1434 = vst [vmem:[%s2644_s27 + $0xe8] sm:$0xff] %v1392_v41 }
 0x2a8   : > { %1433 = vst [vmem:[%s2644_s27 + $0xe0] sm:$0xff] %v1387_v0 }
 0x2ac   : > { %v1706_v43 = vpop.f32.mrb[78].mxu1 }
 0x2ad   : > { %v1402_v44 = vadd.f32 %v1706_v43, %v2640_v46  ;;  %v1396_v45 = vpop.f32.mrb[79].mxu1 }
 0x2ae   : > { %v1397_v47 = vadd.f32 %v2640_v46, %v1396_v45 }
 0x2af   : > { %1436 = vst [vmem:[%s2644_s27 + $0xf8] sm:$0xff] %v1402_v44 }
 0x2b0   : > { %1435 = vst [vmem:[%s2644_s27 + $0xf0] sm:$0xff] %v1397_v47 }
 0x2b1   : > { %1938 = shalt.err (!%p1935_p5)
}
 0x2b2   : > { %s1939_s13 = scalar_lea.hbm %s2710_s21, 4096  ;;  %s1943_s6 = scalar_lea.hbm %s2768_s4, 8192 }
 0x2b3   : > { %p1940_p4 = scmp.ne.s32.totalorder %s2710_s21, %s1939_s13  ;;  %p1944_p12 = scmp.lt.u32.totalorder %s2710_s21, %s2768_s4 }
 0x2b4   : > { %p1945_p1 = scmp.lt.u32.totalorder %s1943_s6, %s1939_s13  ;;  %p1947_p8 = scmp.lt.u32.totalorder %s1939_s13, %s2710_s21 }
 0x2b5   : > { %p1941_p7 = pnand %p1940_p4, %p2776_p9 }
 0x2b6   : > { %p1946_p3 = por %p1945_p1, %p1944_p12 }
 0x2b7   : > { %p1942_p10 = pneg %p1941_p7 }
 0x2b8   : > { %p1948_p11 = por %p1947_p8, %p1946_p3 }
 0x2ba   : > { %p1949_p0 = pnand %p1948_p11, %p1942_p10 }
 0x2bc   : > { %1952 = shalt.err (!%p1949_p0)
}
 0x2bd   : > { %s2015_s7 = smov 128   ;;  %s2016_s9 = smov 8  }
 0x2be   : > { %1829 = dma.vmem_to_hbm [thread:$0]  (%p2776_p9), %s2712_s8, 4096, %s2710_s21, %s1438_s18, %s2015_s7, %s2015_s7, %s2016_s9  }
 0x2bf PF: > { %s1466_s11 = sand.u32 1, %s1987_s15   ;;  %p2777_p6 = scmp.ne.s32.totalorder %s2773_s30, 0 }
 0x2c0   : > { %p2778_p13 = scmp.ge.s32.totalorder %s2007_s20, 2  ;;  %s1467_s24 = scalar_lea.sflag [#allocation5], %s1466_s11 }
 0x2c2   : > { %p1836_p2 = pnand %p2778_p13, %p2777_p6 }
 0x2c4   : > { %1982 = dma.done.wait (!%p1836_p2), %s1467_s24, 4096  }
 0x2c5   : > { %1984 = vsyncadd (!%p1836_p2), %s1467_s24, 4294963200  ;;  %s20_s20 = sadd.s32 1, %s2007_s20   ;;  %s2779_s15 = smov %s1991_s16 }
 0x2c6   : > { %p17_p5 = scmp.ge.s32.totalorder %s20_s20, 4   ;;  %s2780_s16 = smov %s1995_s17 }
 0x2c7   : > { %s2781_s17 = smov %s2098_s29  ;;  %s2782_s18 = smov %s2003_s19 }
 0x2c8   : > { %s2783_s19 = smov %s2785_s23  ;;  %19 = sbr.rel (!%p17_p5) target bundleno = 6 (0x6), region = 92 }
 0x2cf   :  { %1472 = vsyncpa [#allocation4], 1 }
 0x2d0   :  { %1474 = vsyncpa [#allocation4 + $0x1], 1 }
 0x2d1   :  { %1475 = vsyncpa [#allocation5], 1 }
 0x2d2   :  { %1477 = vsyncpa [#allocation5 + $0x1], 1 }

</bundles_post_ra>
